<compile_context>
chip_gen: v5e
topology: v5e:2x2
jax: 0.10.0
libtpu: 0.0.40
codegen_flags: <defaults>
</compile_context>

<pallas_src>
import functools

import numpy as np
import jax
import jax.numpy as jnp
from jax import lax
from jax.experimental import pallas as pl
from jax.experimental.pallas import tpu as pltpu

EPS = 1e-5


# --------------------------------------------------------------------------- #
# Kernels
# --------------------------------------------------------------------------- #
def _bn_stats_kernel(x_ref, part_ref):
    """Per-batch-tile partial sums for BN1 statistics: rows = [sum(x), sum(x*x)]."""
    x = x_ref[...].astype(jnp.float32)                                 # (TN, F)
    part_ref[0, 0:1, :] = jnp.sum(x, axis=0, keepdims=True)           # (1, F)
    part_ref[0, 1:2, :] = jnp.sum(x * x, axis=0, keepdims=True)       # (1, F)


def _bn1_relu_linear1_kernel(x_ref, aff1_ref, w1_ref, h_ref, part_ref, *,
                             n_valid, tile_n, masked):
    """h = ReLU(x*scale1 + shift1) @ W1  (bf16 MXU inputs, f32 accum), stored bf16,
       plus per-tile [sum(h), sum(h*h)] (from the f32 accumulator) for BN2 stats.
       Linear1's bias is omitted: it cancels exactly in BN2's mean subtraction."""
    x = x_ref[...].astype(jnp.float32)                                 # (TN, F)
    a = jnp.maximum(x * aff1_ref[0:1, :] + aff1_ref[1:2, :], 0.0)
    h = jnp.dot(a.astype(jnp.bfloat16), w1_ref[...],
                preferred_element_type=jnp.float32)                    # (TN, H) f32
    h_ref[...] = h.astype(h_ref.dtype)                                 # bf16 store
    if masked:  # static Python flag: only when the batch was padded
        row = (pl.program_id(0) * tile_n
               + lax.broadcasted_iota(jnp.int32, (tile_n, 1), 0))
        h = jnp.where(row < n_valid, h, 0.0)                           # drop pad rows
    part_ref[0, 0:1, :] = jnp.sum(h, axis=0, keepdims=True)
    part_ref[0, 1:2, :] = jnp.sum(h * h, axis=0, keepdims=True)


def _bn2_relu_linear2_res_kernel(h_ref, x_ref, aff2_ref, w2_ref, bl2_ref, o_ref):
    """y = ReLU(h*scale2 + shift2) @ W2 + b2 + x."""
    h = h_ref[...].astype(jnp.float32)                                 # (TN, H)
    a = jnp.maximum(h * aff2_ref[0:1, :] + aff2_ref[1:2, :], 0.0)
    y = jnp.dot(a.astype(jnp.bfloat16), w2_ref[...],
                preferred_element_type=jnp.float32) + bl2_ref[...]     # (TN, F) f32
    o_ref[...] = (y + x_ref[...].astype(jnp.float32)).astype(o_ref.dtype)


# --------------------------------------------------------------------------- #
# Wrapper helpers
# --------------------------------------------------------------------------- #
def _vmem_budget_bytes():
    """~80% of this generation's physical VMEM (v5e/v6e: 128 MiB, v7x: 64 MiB)."""
    cap = None
    try:
        cap = getattr(pltpu.get_tpu_info(), "vmem_capacity_bytes", None)
    except Exception:
        cap = None
    if not cap:
        cap = 64 * 1024 * 1024  # conservative fallback = v7x physical VMEM
    return int(cap * 0.8)


def _round_up(a, b):
    return -(-a // b) * b


def _pick_batch_tile(n, f, h, budget):
    """Largest batch tile that (a) keeps T >= 2 for pipelining/megacore and
       (b) fits the double-buffered streaming footprint + resident weights."""
    bf, f32 = 2, 4

    def fits(tn):
        p2_stream = tn * f * f32 + tn * h * bf + 2 * h * f32
        p2_const = f * h * bf + 2 * f * f32
        p3_stream = tn * h * bf + 2 * tn * f * f32
        p3_const = h * f * bf + 2 * h * f32 + f * f32
        need = max(2 * p2_stream + 2 * p2_const, 2 * p3_stream + 2 * p3_const)
        return need <= 0.6 * budget

    for t in (512, 256, 128, 64, 32, 16):
        if 2 * t <= n and fits(t):
            return t
    # Tiny batch (or very large weights): single/min tile; 16 keeps the bf16 h
    # tile sublane-aligned.  Padded rows are masked out of the statistics.
    return 16


def _compiler_params(blocks, budget):
    """'parallel' batch axis + a VMEM limit sized from the per-step block bytes."""
    step_bytes = sum(int(np.prod(s)) * np.dtype(d).itemsize for s, d in blocks)
    limit = int(min(max(4 * step_bytes, 16 * 1024 * 1024), budget))
    return pltpu.CompilerParams(dimension_semantics=("parallel",),
                                vmem_limit_bytes=limit)


def _finalize_affine(partials, gamma, beta, n):
    """Full-batch mean/var from per-tile [sum, sum_sq]; fold into scale/shift."""
    s = jnp.sum(partials, axis=0)                        # (2, feat)
    mean = s[0] / n
    var = jnp.maximum(s[1] / n - mean * mean, 0.0)       # biased var (PyTorch train)
    scale = gamma.reshape(-1) * jax.lax.rsqrt(var + EPS)
    shift = beta.reshape(-1) - mean * scale
    return jnp.stack([scale, shift], axis=0)             # (2, feat) f32


# --------------------------------------------------------------------------- #
# Forward
# --------------------------------------------------------------------------- #
def resblock_forward(x, params):
    """x: (N, F) float32. params: dict (see init_params). Returns (N, F)."""
    N, F = x.shape
    H = params["w1"].shape[1]

    budget = _vmem_budget_bytes()
    tn = _pick_batch_tile(N, F, H, budget)
    Np = _round_up(N, tn)
    T = Np // tn
    padded = Np != N

    f32, bf16 = jnp.float32, jnp.bfloat16
    w1 = params["w1"].astype(bf16)        # bf16 MXU inputs halve weight traffic
    w2 = params["w2"].astype(bf16)
    bl2 = params["bl2"].astype(f32)
    # Zero-pad the batch to a tile multiple (zero rows contribute nothing to the
    # BN1 sums; BN2 sums are masked in-kernel).
    x_p = jnp.zeros((Np, F), x.dtype).at[:N].set(x) if padded else x

    # ---- Pass 1: BN1 full-batch statistics (tiled partial sums). ----
    part1 = pl.pallas_call(
        _bn_stats_kernel,
        out_shape=jax.ShapeDtypeStruct((T, 2, F), f32),
        grid=(T,),
        in_specs=[pl.BlockSpec((tn, F), lambda i: (i, 0))],
        out_specs=pl.BlockSpec((1, 2, F), lambda i: (i, 0, 0)),
        compiler_params=_compiler_params(
            [((tn, F), f32), ((1, 2, F), f32)], budget),
    )(x_p)
    aff1 = _finalize_affine(part1, params["g1"], params["b1"], N)     # (2, F)

    # ---- Pass 2: BN1 -> ReLU -> Linear1 (bias dropped) -> bf16 h + BN2 stats. ----
    h, part2 = pl.pallas_call(
        functools.partial(_bn1_relu_linear1_kernel,
                          n_valid=N, tile_n=tn, masked=padded),
        out_shape=(jax.ShapeDtypeStruct((Np, H), bf16),
                   jax.ShapeDtypeStruct((T, 2, H), f32)),
        grid=(T,),
        in_specs=[
            pl.BlockSpec((tn, F), lambda i: (i, 0)),     # x tile
            pl.BlockSpec((2, F), lambda i: (0, 0)),      # packed BN1 scale/shift
            pl.BlockSpec((F, H), lambda i: (0, 0)),      # W1 (bf16, resident)
        ],
        out_specs=(pl.BlockSpec((tn, H), lambda i: (i, 0)),
                   pl.BlockSpec((1, 2, H), lambda i: (i, 0, 0))),
        compiler_params=_compiler_params(
            [((tn, F), f32), ((2, F), f32), ((F, H), bf16),
             ((tn, H), bf16), ((1, 2, H), f32)], budget),
    )(x_p, aff1, w1)
    aff2 = _finalize_affine(part2, params["g2"], params["b2"], N)     # (2, H)

    # ---- Pass 3: BN2 -> ReLU -> Linear2 -> + x residual. ----
    y = pl.pallas_call(
        _bn2_relu_linear2_res_kernel,
        out_shape=jax.ShapeDtypeStruct((Np, F), x.dtype),
        grid=(T,),
        in_specs=[
            pl.BlockSpec((tn, H), lambda i: (i, 0)),     # h tile (bf16)
            pl.BlockSpec((tn, F), lambda i: (i, 0)),     # x tile (residual, re-read)
            pl.BlockSpec((2, H), lambda i: (0, 0)),      # packed BN2 scale/shift
            pl.BlockSpec((H, F), lambda i: (0, 0)),      # W2 (bf16, resident)
            pl.BlockSpec((1, F), lambda i: (0, 0)),      # Linear2 bias
        ],
        out_specs=pl.BlockSpec((tn, F), lambda i: (i, 0)),
        compiler_params=_compiler_params(
            [((tn, H), bf16), ((tn, F), f32), ((2, H), f32), ((H, F), bf16),
             ((1, F), f32), ((tn, F), f32)], budget),
    )(h, x_p, aff2, w2, bl2)
    return y[:N] if padded else y


# --------------------------------------------------------------------------- #
# References & params
# --------------------------------------------------------------------------- #
def _reference_f32(x, p):
    """Pure-f32 replica of the PyTorch training-mode forward (with both biases)."""
    m1 = x.mean(0, keepdims=True)
    v1 = ((x - m1) ** 2).mean(0, keepdims=True)
    h = (x - m1) / jnp.sqrt(v1 + EPS) * p["g1"] + p["b1"]
    h = jnp.maximum(h, 0.0)
    h = h @ p["w1"] + p["bl1"]
    m2 = h.mean(0, keepdims=True)
    v2 = ((h - m2) ** 2).mean(0, keepdims=True)
    h = (h - m2) / jnp.sqrt(v2 + EPS) * p["g2"] + p["b2"]
    h = jnp.maximum(h, 0.0)
    y = h @ p["w2"] + p["bl2"]
    return y + x


def _reference_matched(x, p):
    """Same math as the kernels: one-pass stats, bf16 matmul inputs, bias-free
       Linear1, bf16-stored h (stats from f32), f32 accumulation."""
    n = x.shape[0]

    def affine_params(z, g, b):
        mean = z.mean(0)
        var = jnp.maximum((z * z).mean(0) - mean * mean, 0.0)
        scale = g.reshape(-1) * jax.lax.rsqrt(var + EPS)
        shift = b.reshape(-1) - mean * scale
        return scale, shift

    s1, t1 = affine_params(x, p["g1"], p["b1"])
    a1 = jnp.maximum(x * s1 + t1, 0.0)
    h = jnp.dot(a1.astype(jnp.bfloat16), p["w1"].astype(jnp.bfloat16),
                preferred_element_type=jnp.float32)      # bl1 cancels in BN2
    s2, t2 = affine_params(h, p["g2"], p["b2"])          # stats from f32 h
    h16 = h.astype(jnp.bfloat16).astype(jnp.float32)     # bf16 storage round-trip
    a2 = jnp.maximum(h16 * s2 + t2, 0.0)
    y = jnp.dot(a2.astype(jnp.bfloat16), p["w2"].astype(jnp.bfloat16),
                preferred_element_type=jnp.float32) + p["bl2"]
    return y + x


def init_params(key, input_size, hidden_size):
    ks = jax.random.split(key, 4)
    # BatchNorm affine params: PyTorch inits gamma=1, beta=0.
    g1 = jnp.ones((1, input_size), jnp.float32)
    b1 = jnp.zeros((1, input_size), jnp.float32)
    g2 = jnp.ones((1, hidden_size), jnp.float32)
    b2 = jnp.zeros((1, hidden_size), jnp.float32)
    # Linear weights stored transposed (in, out) + biases, PyTorch-style uniform.
    lim1 = 1.0 / float(np.sqrt(input_size))
    w1 = jax.random.uniform(ks[0], (input_size, hidden_size), jnp.float32, -lim1, lim1)
    bl1 = jax.random.uniform(ks[1], (1, hidden_size), jnp.float32, -lim1, lim1)
    lim2 = 1.0 / float(np.sqrt(hidden_size))
    w2 = jax.random.uniform(ks[2], (hidden_size, input_size), jnp.float32, -lim2, lim2)
    bl2 = jax.random.uniform(ks[3], (1, input_size), jnp.float32, -lim2, lim2)
    return dict(g1=g1, b1=b1, w1=w1, bl1=bl1, g2=g2, b2=b2, w2=w2, bl2=bl2)


if __name__ == "__main__":
    key = jax.random.PRNGKey(0)
    fwd = jax.jit(resblock_forward)

    # 1) lane-aligned case with multiple batch tiles (exercises tn=256, T=2),
    # 2) non-divisible batch (exercises padding + stat masking),
    # 3) the small ragged case from the original demo (full-dim blocks).
    for batch, input_size, hidden_size in [(512, 128, 256), (200, 128, 256), (16, 32, 64)]:
        key, k_x, k_p = jax.random.split(key, 3)
        x = jax.random.normal(k_x, (batch, input_size), jnp.float32)
        params = init_params(k_p, input_size, hidden_size)

        out = jax.block_until_ready(fwd(x, params))
        assert out.shape == (batch, input_size)
        assert out.dtype == x.dtype

        # Tight check against a reference with matching (bf16) precision choices.
        ref_m = _reference_matched(x, params)
        assert jnp.allclose(out, ref_m, atol=2e-3, rtol=2e-3), \
            float(jnp.max(jnp.abs(out - ref_m)))
        # Looser check against the exact f32 PyTorch-style math (differences come
        # only from bf16 MXU inputs + bf16 storage of h).
        ref = _reference_f32(x, params)
        assert jnp.allclose(out, ref, atol=5e-2, rtol=5e-2), \
            float(jnp.max(jnp.abs(out - ref)))

    print("KERNEL_OK")
</pallas_src>

<mosaic_0001>
module attributes {stable_mosaic.version = 11 : i64} {
  func.func @_bn_stats_kernel(%arg0: i32, %arg1: memref<256x128xf32, #tpu.memory_space<vmem>>, %arg2: memref<1x2x128xf32, #tpu.memory_space<vmem>>) attributes {dimension_semantics = [#tpu.dimension_semantics<parallel>], iteration_bounds = array<i64: 2>, scalar_prefetch = 0 : i64, scratch_operands = 0 : i64, tpu.core_type = #tpu.core_type<tc>, window_params = [{transform_indices = @transform_0, window_bounds = array<i64: 256, 128>}, {transform_indices = @transform_1, window_bounds = array<i64: 1, 2, 128>}]} {
    %c0 = arith.constant 0 : index
    %c0_0 = arith.constant 0 : index
    %0 = vector.load %arg1[%c0, %c0_0] : memref<256x128xf32, #tpu.memory_space<vmem>>, vector<256x128xf32>
    %cst = arith.constant dense<0.000000e+00> : vector<128xf32>
    %1 = vector.multi_reduction <add>, %0, %cst [0] : vector<256x128xf32> to vector<128xf32>
    %2 = vector.shape_cast %1 : vector<128xf32> to vector<1x128xf32>
    %c0_1 = arith.constant 0 : index
    %c0_2 = arith.constant 0 : index
    %c0_3 = arith.constant 0 : index
    %3 = vector.load %arg2[%c0_1, %c0_2, %c0_3] : memref<1x2x128xf32, #tpu.memory_space<vmem>>, vector<1x1x128xf32>
    %4 = vector.shape_cast %3 : vector<1x1x128xf32> to vector<1x128xf32>
    %5 = vector.shape_cast %2 : vector<1x128xf32> to vector<1x1x128xf32>
    tpu.vector_store %arg2[%c0_1, %c0_2, %c0_3], %5 {strides = array<i32>} : memref<1x2x128xf32, #tpu.memory_space<vmem>>, vector<1x1x128xf32>,
    %6 = arith.mulf %0, %0 : vector<256x128xf32>
    %cst_4 = arith.constant dense<0.000000e+00> : vector<128xf32>
    %7 = vector.multi_reduction <add>, %6, %cst_4 [0] : vector<256x128xf32> to vector<128xf32>
    %8 = vector.shape_cast %7 : vector<128xf32> to vector<1x128xf32>
    %c0_5 = arith.constant 0 : index
    %c1 = arith.constant 1 : index
    %c0_6 = arith.constant 0 : index
    %9 = vector.load %arg2[%c0_5, %c1, %c0_6] : memref<1x2x128xf32, #tpu.memory_space<vmem>>, vector<1x1x128xf32>
    %10 = vector.shape_cast %9 : vector<1x1x128xf32> to vector<1x128xf32>
    %11 = vector.shape_cast %8 : vector<1x128xf32> to vector<1x1x128xf32>
    tpu.vector_store %arg2[%c0_5, %c1, %c0_6], %11 {strides = array<i32>} : memref<1x2x128xf32, #tpu.memory_space<vmem>>, vector<1x1x128xf32>,
    return
  }
  func.func @transform_0(%arg0: i32) -> (i32, i32) {
    %c0_i32 = arith.constant 0 : i32
    %c0_i32_0 = arith.constant 0 : i32
    return %arg0, %c0_i32 : i32, i32
  }
  func.func @transform_1(%arg0: i32) -> (i32, i32, i32) {
    %c0_i32 = arith.constant 0 : i32
    %c0_i32_0 = arith.constant 0 : i32
    %c0_i32_1 = arith.constant 0 : i32
    return %arg0, %c0_i32, %c0_i32_0 : i32, i32, i32
  }
}

module attributes {stable_mosaic.version = 11 : i64} {
  func.func @_bn1_relu_linear1_kernel(%arg0: i32, %arg1: memref<256x128xf32, #tpu.memory_space<vmem>>, %arg2: memref<2x128xf32, #tpu.memory_space<vmem>>, %arg3: memref<128x256xbf16, #tpu.memory_space<vmem>>, %arg4: memref<256x256xbf16, #tpu.memory_space<vmem>>, %arg5: memref<1x2x256xf32, #tpu.memory_space<vmem>>) attributes {dimension_semantics = [#tpu.dimension_semantics<parallel>], iteration_bounds = array<i64: 2>, scalar_prefetch = 0 : i64, scratch_operands = 0 : i64, tpu.core_type = #tpu.core_type<tc>, window_params = [{transform_indices = @transform_0, window_bounds = array<i64: 256, 128>}, {pipeline_mode = #tpu.pipeline_mode<synchronous>, transform_indices = @transform_1, window_bounds = array<i64: 2, 128>}, {pipeline_mode = #tpu.pipeline_mode<synchronous>, transform_indices = @transform_2, window_bounds = array<i64: 128, 256>}, {transform_indices = @transform_3, window_bounds = array<i64: 256, 256>}, {transform_indices = @transform_4, window_bounds = array<i64: 1, 2, 256>}]} {
    %c0 = arith.constant 0 : index
    %c0_0 = arith.constant 0 : index
    %0 = vector.load %arg1[%c0, %c0_0] : memref<256x128xf32, #tpu.memory_space<vmem>>, vector<256x128xf32>
    %c0_1 = arith.constant 0 : index
    %c0_2 = arith.constant 0 : index
    %1 = vector.load %arg2[%c0_1, %c0_2] : memref<2x128xf32, #tpu.memory_space<vmem>>, vector<1x128xf32>
    %2 = vector.broadcast %1 : vector<1x128xf32> to vector<256x128xf32>
    %3 = arith.mulf %0, %2 : vector<256x128xf32>
    %c1 = arith.constant 1 : index
    %c0_3 = arith.constant 0 : index
    %4 = vector.load %arg2[%c1, %c0_3] : memref<2x128xf32, #tpu.memory_space<vmem>>, vector<1x128xf32>
    %5 = vector.broadcast %4 : vector<1x128xf32> to vector<256x128xf32>
    %6 = arith.addf %3, %5 : vector<256x128xf32>
    %cst = arith.constant 0.000000e+00 : f32
    %7 = vector.broadcast %cst : f32 to vector<256x128xf32>
    %8 = arith.maximumf %6, %7 : vector<256x128xf32>
    %9 = arith.truncf %8 : vector<256x128xf32> to vector<256x128xbf16>
    %c0_4 = arith.constant 0 : index
    %c0_5 = arith.constant 0 : index
    %10 = vector.load %arg3[%c0_4, %c0_5] : memref<128x256xbf16, #tpu.memory_space<vmem>>, vector<128x256xbf16>
    %cst_6 = arith.constant dense<0.000000e+00> : vector<256x256xf32>
    %11 = tpu.matmul %9, %10, %cst_6 {dimension_numbers = #tpu.dot_dimension_numbers<[1], [0], [0], [1], [0, 0, 1, 1], [], []>} : vector<256x128xbf16>, vector<128x256xbf16>, vector<256x256xf32> -> vector<256x256xf32>
    %12 = arith.truncf %11 : vector<256x256xf32> to vector<256x256xbf16>
    %c0_7 = arith.constant 0 : index
    %c0_8 = arith.constant 0 : index
    %13 = vector.load %arg4[%c0_7, %c0_8] : memref<256x256xbf16, #tpu.memory_space<vmem>>, vector<256x256xbf16>
    tpu.vector_store %arg4[%c0_7, %c0_8], %12 {strides = array<i32>} : memref<256x256xbf16, #tpu.memory_space<vmem>>, vector<256x256xbf16>,
    %cst_9 = arith.constant dense<0.000000e+00> : vector<256xf32>
    %14 = vector.multi_reduction <add>, %11, %cst_9 [0] : vector<256x256xf32> to vector<256xf32>
    %15 = vector.shape_cast %14 : vector<256xf32> to vector<1x256xf32>
    %c0_10 = arith.constant 0 : index
    %c0_11 = arith.constant 0 : index
    %c0_12 = arith.constant 0 : index
    %16 = vector.load %arg5[%c0_10, %c0_11, %c0_12] : memref<1x2x256xf32, #tpu.memory_space<vmem>>, vector<1x1x256xf32>
    %17 = vector.shape_cast %16 : vector<1x1x256xf32> to vector<1x256xf32>
    %18 = vector.shape_cast %15 : vector<1x256xf32> to vector<1x1x256xf32>
    tpu.vector_store %arg5[%c0_10, %c0_11, %c0_12], %18 {strides = array<i32>} : memref<1x2x256xf32, #tpu.memory_space<vmem>>, vector<1x1x256xf32>,
    %19 = arith.mulf %11, %11 : vector<256x256xf32>
    %cst_13 = arith.constant dense<0.000000e+00> : vector<256xf32>
    %20 = vector.multi_reduction <add>, %19, %cst_13 [0] : vector<256x256xf32> to vector<256xf32>
    %21 = vector.shape_cast %20 : vector<256xf32> to vector<1x256xf32>
    %c0_14 = arith.constant 0 : index
    %c1_15 = arith.constant 1 : index
    %c0_16 = arith.constant 0 : index
    %22 = vector.load %arg5[%c0_14, %c1_15, %c0_16] : memref<1x2x256xf32, #tpu.memory_space<vmem>>, vector<1x1x256xf32>
    %23 = vector.shape_cast %22 : vector<1x1x256xf32> to vector<1x256xf32>
    %24 = vector.shape_cast %21 : vector<1x256xf32> to vector<1x1x256xf32>
    tpu.vector_store %arg5[%c0_14, %c1_15, %c0_16], %24 {strides = array<i32>} : memref<1x2x256xf32, #tpu.memory_space<vmem>>, vector<1x1x256xf32>,
    return
  }
  func.func @transform_0(%arg0: i32) -> (i32, i32) {
    %c0_i32 = arith.constant 0 : i32
    %c0_i32_0 = arith.constant 0 : i32
    return %arg0, %c0_i32 : i32, i32
  }
  func.func @transform_1(%arg0: i32) -> (i32, i32) {
    %c0_i32 = arith.constant 0 : i32
    %c0_i32_0 = arith.constant 0 : i32
    %c0_i32_1 = arith.constant 0 : i32
    return %c0_i32, %c0_i32_0 : i32, i32
  }
  func.func @transform_2(%arg0: i32) -> (i32, i32) {
    %c0_i32 = arith.constant 0 : i32
    %c0_i32_0 = arith.constant 0 : i32
    %c0_i32_1 = arith.constant 0 : i32
    return %c0_i32, %c0_i32_0 : i32, i32
  }
  func.func @transform_3(%arg0: i32) -> (i32, i32) {
    %c0_i32 = arith.constant 0 : i32
    %c0_i32_0 = arith.constant 0 : i32
    return %arg0, %c0_i32 : i32, i32
  }
  func.func @transform_4(%arg0: i32) -> (i32, i32, i32) {
    %c0_i32 = arith.constant 0 : i32
    %c0_i32_0 = arith.constant 0 : i32
    %c0_i32_1 = arith.constant 0 : i32
    return %arg0, %c0_i32, %c0_i32_0 : i32, i32, i32
  }
}

module attributes {stable_mosaic.version = 11 : i64} {
  func.func @_bn2_relu_linear2_res_kernel(%arg0: i32, %arg1: memref<256x256xbf16, #tpu.memory_space<vmem>>, %arg2: memref<256x128xf32, #tpu.memory_space<vmem>>, %arg3: memref<2x256xf32, #tpu.memory_space<vmem>>, %arg4: memref<256x128xbf16, #tpu.memory_space<vmem>>, %arg5: memref<1x128xf32, #tpu.memory_space<vmem>>, %arg6: memref<256x128xf32, #tpu.memory_space<vmem>>) attributes {dimension_semantics = [#tpu.dimension_semantics<parallel>], iteration_bounds = array<i64: 2>, scalar_prefetch = 0 : i64, scratch_operands = 0 : i64, tpu.core_type = #tpu.core_type<tc>, window_params = [{transform_indices = @transform_0, window_bounds = array<i64: 256, 256>}, {transform_indices = @transform_1, window_bounds = array<i64: 256, 128>}, {pipeline_mode = #tpu.pipeline_mode<synchronous>, transform_indices = @transform_2, window_bounds = array<i64: 2, 256>}, {pipeline_mode = #tpu.pipeline_mode<synchronous>, transform_indices = @transform_3, window_bounds = array<i64: 256, 128>}, {pipeline_mode = #tpu.pipeline_mode<synchronous>, transform_indices = @transform_4, window_bounds = array<i64: 1, 128>}, {transform_indices = @transform_5, window_bounds = array<i64: 256, 128>}]} {
    %c0 = arith.constant 0 : index
    %c0_0 = arith.constant 0 : index
    %0 = vector.load %arg1[%c0, %c0_0] : memref<256x256xbf16, #tpu.memory_space<vmem>>, vector<256x256xbf16>
    %1 = arith.extf %0 : vector<256x256xbf16> to vector<256x256xf32>
    %c0_1 = arith.constant 0 : index
    %c0_2 = arith.constant 0 : index
    %2 = vector.load %arg3[%c0_1, %c0_2] : memref<2x256xf32, #tpu.memory_space<vmem>>, vector<1x256xf32>
    %3 = vector.broadcast %2 : vector<1x256xf32> to vector<256x256xf32>
    %4 = arith.mulf %1, %3 : vector<256x256xf32>
    %c1 = arith.constant 1 : index
    %c0_3 = arith.constant 0 : index
    %5 = vector.load %arg3[%c1, %c0_3] : memref<2x256xf32, #tpu.memory_space<vmem>>, vector<1x256xf32>
    %6 = vector.broadcast %5 : vector<1x256xf32> to vector<256x256xf32>
    %7 = arith.addf %4, %6 : vector<256x256xf32>
    %cst = arith.constant 0.000000e+00 : f32
    %8 = vector.broadcast %cst : f32 to vector<256x256xf32>
    %9 = arith.maximumf %7, %8 : vector<256x256xf32>
    %10 = arith.truncf %9 : vector<256x256xf32> to vector<256x256xbf16>
    %c0_4 = arith.constant 0 : index
    %c0_5 = arith.constant 0 : index
    %11 = vector.load %arg4[%c0_4, %c0_5] : memref<256x128xbf16, #tpu.memory_space<vmem>>, vector<256x128xbf16>
    %cst_6 = arith.constant dense<0.000000e+00> : vector<256x128xf32>
    %12 = tpu.matmul %10, %11, %cst_6 {dimension_numbers = #tpu.dot_dimension_numbers<[1], [0], [0], [1], [0, 0, 1, 1], [], []>} : vector<256x256xbf16>, vector<256x128xbf16>, vector<256x128xf32> -> vector<256x128xf32>
    %c0_7 = arith.constant 0 : index
    %c0_8 = arith.constant 0 : index
    %13 = vector.load %arg5[%c0_7, %c0_8] : memref<1x128xf32, #tpu.memory_space<vmem>>, vector<1x128xf32>
    %14 = vector.broadcast %13 : vector<1x128xf32> to vector<256x128xf32>
    %15 = arith.addf %12, %14 : vector<256x128xf32>
    %c0_9 = arith.constant 0 : index
    %c0_10 = arith.constant 0 : index
    %16 = vector.load %arg2[%c0_9, %c0_10] : memref<256x128xf32, #tpu.memory_space<vmem>>, vector<256x128xf32>
    %17 = arith.addf %15, %16 : vector<256x128xf32>
    %c0_11 = arith.constant 0 : index
    %c0_12 = arith.constant 0 : index
    %18 = vector.load %arg6[%c0_11, %c0_12] : memref<256x128xf32, #tpu.memory_space<vmem>>, vector<256x128xf32>
    tpu.vector_store %arg6[%c0_11, %c0_12], %17 {strides = array<i32>} : memref<256x128xf32, #tpu.memory_space<vmem>>, vector<256x128xf32>,
    return
  }
  func.func @transform_0(%arg0: i32) -> (i32, i32) {
    %c0_i32 = arith.constant 0 : i32
    %c0_i32_0 = arith.constant 0 : i32
    return %arg0, %c0_i32 : i32, i32
  }
  func.func @transform_1(%arg0: i32) -> (i32, i32) {
    %c0_i32 = arith.constant 0 : i32
    %c0_i32_0 = arith.constant 0 : i32
    return %arg0, %c0_i32 : i32, i32
  }
  func.func @transform_2(%arg0: i32) -> (i32, i32) {
    %c0_i32 = arith.constant 0 : i32
    %c0_i32_0 = arith.constant 0 : i32
    %c0_i32_1 = arith.constant 0 : i32
    return %c0_i32, %c0_i32_0 : i32, i32
  }
  func.func @transform_3(%arg0: i32) -> (i32, i32) {
    %c0_i32 = arith.constant 0 : i32
    %c0_i32_0 = arith.constant 0 : i32
    %c0_i32_1 = arith.constant 0 : i32
    return %c0_i32, %c0_i32_0 : i32, i32
  }
  func.func @transform_4(%arg0: i32) -> (i32, i32) {
    %c0_i32 = arith.constant 0 : i32
    %c0_i32_0 = arith.constant 0 : i32
    %c0_i32_1 = arith.constant 0 : i32
    return %c0_i32, %c0_i32_0 : i32, i32
  }
  func.func @transform_5(%arg0: i32) -> (i32, i32) {
    %c0_i32 = arith.constant 0 : i32
    %c0_i32_0 = arith.constant 0 : i32
    return %arg0, %c0_i32 : i32, i32
  }
}

</mosaic_0001>

<bundles_post_ra>
// kernel: resblock_forward.3
= control target key start
LH: loop header
LB: loop body
LE: loop exit
PB: predicated region body
PF: predicated region fallthrough
CT: control target
= control target key end

     0   :  { %6 = vsyncpa [#allocation3], 0  ;;  %s600_s0 = inlined_call_operand.hbm [shape: f32[512,128], index: 0, kind: input, shape index: {}]   ;;  %s601_s1 = inlined_call_operand.vmem [shape: f32[2,2,128], index: 1, kind: output, shape index: {}]  }
   0x1   :  { %8 = vsyncpa [#allocation3 + $0x1], 0  ;;  %s474_s6 = smov 0   ;;  %s476_s7 = smov 0  }
   0x2   :  { %s478_s8 = smov 0   ;;  %s480_s9 = smov 0  }
   0x3 LB: > { %s493_s10 = sadd.s32 4294967295, %s460_s9   ;;  %s496_s11 = sadd.s32 1, %s460_s9   ;;  %s460_s9 = sphi %s480_s9, %s608_s9   ;;  %s456_s8 = sphi %s478_s8, %s607_s8   ;;  %s452_s7 = sphi %s476_s7, %s606_s7   ;;  %s448_s6 = sphi %s474_s6, %s605_s6  }
   0x4   : > { %s18_s12 = ssub.s32 %s460_s9, %s496_s11  ;;  %s21_s13 = sadd.s32 1, %s456_s8 }
   0x5   : > { %p19_p0 = scmp.eq.s32.totalorder %s18_s12, 0  ;;  %p28_p1 = scmp.ne.s32.totalorder %s456_s8, %s452_s7 }
   0x6   : > { %p29_p2 = scmp.eq.s32.totalorder %s460_s9, 0  ;;  %p34_p3 = scmp.ne.s32.totalorder %s452_s7, %s448_s6 }
   0x7   : > { %s506_s14 = scalar_select %p19_p0, %s456_s8, %s21_s13  }
   0x8   : > { %p508_p4 = por %p29_p2, %p28_p1  ;;  %p35_p5 = scmp.eq.s32.totalorder %s493_s10, 0 }
   0x9   : > { %p361_p6 = scmp.lt.s32.totalorder %s460_s9, 2  ;;  %s84_s17 = sand.u32 1, %s456_s8  }
   0xa   : > { %p514_p7 = por %p35_p5, %p34_p3  ;;  %s346_s18 = sshll.u32 %s84_s17, 8 }
   0xb   : > { %s354_s19 = sshll.u32 %s460_s9, 8  ;;  %s88_s23 = scalar_lea.vmem [#allocation2], %s346_s18 }
   0xc   : > { %s93_s22 = scalar_lea.hbm %s600_s0, %s354_s19  ;;  %s96_s24 = sshll.u32 %s88_s23, 4  ;;  %s97_s24 = int_to_ptr.vmem [resolvable:$true] %s96_s24 }
   0xd   : > { %s94_s25 = sshll.u32 %s93_s22, 4  ;;  %p525_p8 = pnand %p361_p6, %p508_p4  ;;  %s95_s25 = int_to_ptr.hbm [resolvable:$true] %s94_s25 }
   0xe   : > { %p349_p9 = scmp.ge.s32.totalorder %s460_s9, 1  ;;  %s85_s27 = scalar_lea.sflag [#allocation3], %s84_s17 }
   0xf   : > { %s396_s28 = sshra.s32 %s95_s25, 4  ;;  %p400_p11 = pneg %p525_p8  ;;  %s397_s28 = int_to_ptr.hbm [resolvable:$true] %s396_s28 }
  0x10   : > { %s398_s29 = scalar_lea.hbm %s397_s28, 256  ;;  %s403_s3 = scalar_lea.hbm %s600_s0, 512 }
  0x11   : > { %p399_p10 = scmp.ne.s32.totalorder %s397_s28, %s398_s29  ;;  %p404_p0 = scmp.lt.s32.totalorder %s397_s28, %s600_s0 }
  0x12   : > { %p405_p1 = scmp.lt.s32.totalorder %s403_s3, %s398_s29 }
  0x13   : > { %p401_p12 = pnand %p400_p11, %p399_p10 }
  0x14   : > { %p406_p2 = por %p405_p1, %p404_p0 }
  0x15   : > { %p402_p13 = pneg %p401_p12 }
  0x17   : > { %p407_p3 = pnand %p406_p2, %p402_p13 }
  0x19   : > { %410 = shalt.err (!%p407_p3)
}
  0x1a   : > { %s462_s6 = smov 128   ;;  %s463_s12 = smov 8  }
  0x1b   : > { %360 = dma.hbm_to_vmem [thread:$0]  (!%p525_p8), %s95_s25, 4096, %s97_s24, %s85_s27, %s462_s6, %s462_s6, %s463_s12  }
  0x1c   : > { %p104_p4 = scmp.lt.s32.totalorder %s460_s9, 3 }
  0x1e   : > { %p105_p5 = pnand %p349_p9, %p104_p4 }
  0x1f   : > { %s110_s13 = sand.u32 (!%p105_p5), 1, %s452_s7  }
  0x20   : > { %108 = sbr.rel (%p105_p5) target bundleno = 116 (0x74), region = 24  ;;  %s350_s15 = sshll.u32 (!%p105_p5), %s110_s13, 8 }
  0x21   : > { %s111_s17 = scalar_lea.sflag (!%p105_p5), [#allocation3], %s110_s13  ;;  %s544_s18 = scalar_lea.vmem (!%p105_p5), [#allocation2], %s350_s15 }
  0x25   : > { %443 = dma.done.wait (%p514_p7), %s111_s17, 4096  }
  0x26   : > { %445 = vsyncadd (%p514_p7), %s111_s17, 4294963200  ;;  %v138_v0 = vld [vmem:[%s544_s18] sm:$0xff]  ;;  %v139_v1 = vld [vmem:[%s544_s18 + $0x8] sm:$0xff]  ;;  %p134_p6 = scmp.lt.s32.totalorder %s493_s10, 1 }
  0x27   : > { %v140_v2 = vld [vmem:[%s544_s18 + $0x10] sm:$0xff]  ;;  %v141_v3 = vld [vmem:[%s544_s18 + $0x18] sm:$0xff]  ;;  %v170_v4 = vadd.f32 %v139_v1, %v138_v0  ;;  %v208_v5 = vmul.f32 %v138_v0, %v138_v0  ;;  %v209_v6 = vmul.f32 %v139_v1, %v139_v1  ;;  %v142_v8 = vld [vmem:[%s544_s18 + $0x20] sm:$0xff] }
  0x28   : > { %v210_v7 = vmul.f32 %v140_v2, %v140_v2  ;;  %v211_v10 = vmul.f32 %v141_v3, %v141_v3  ;;  %v143_v12 = vld [vmem:[%s544_s18 + $0x28] sm:$0xff]  ;;  %v212_v14 = vmul.f32 %v142_v8, %v142_v8  ;;  %v144_v16 = vld [vmem:[%s544_s18 + $0x30] sm:$0xff]  ;;  %v145_v20 = vld [vmem:[%s544_s18 + $0x38] sm:$0xff]  ;;  %s610_s10 = smov (!%p134_p6, %s493_s10), 1 }
  0x29   : > { %v171_v9 = vadd.f32 %v170_v4, %v140_v2  ;;  %v240_v11 = vadd.f32 %v209_v6, %v208_v5  ;;  %v213_v18 = vmul.f32 %v143_v12, %v143_v12  ;;  %v214_v22 = vmul.f32 %v144_v16, %v144_v16  ;;  %v146_v24 = vld [vmem:[%s544_s18 + $0x40] sm:$0xff]  ;;  %v147_v28 = vld [vmem:[%s544_s18 + $0x48] sm:$0xff]  ;;  %v148_v32 = vld [vmem:[%s544_s18 + $0x50] sm:$0xff]  ;;  %s351_s9 = sshll.u32 %s610_s10, 1 }
  0x2a   : > { %v215_v26 = vmul.f32 %v145_v20, %v145_v20  ;;  %v216_v30 = vmul.f32 %v146_v24, %v146_v24  ;;  %v217_v34 = vmul.f32 %v147_v28, %v147_v28  ;;  %v149_v36 = vld [vmem:[%s544_s18 + $0x58] sm:$0xff]  ;;  %v218_v38 = vmul.f32 %v148_v32, %v148_v32  ;;  %v150_v40 = vld [vmem:[%s544_s18 + $0x60] sm:$0xff]  ;;  %v151_v44 = vld [vmem:[%s544_s18 + $0x68] sm:$0xff]  ;;  %s137_s20 = scalar_lea.vmem %s601_s1, %s351_s9 }
  0x2b   : > { %v172_v13 = vadd.f32 %v171_v9, %v141_v3  ;;  %v241_v15 = vadd.f32 %v240_v11, %v210_v7  ;;  %v219_v42 = vmul.f32 %v149_v36, %v149_v36  ;;  %v220_v46 = vmul.f32 %v150_v40, %v150_v40  ;;  %v152_v48 = vld [vmem:[%s544_s18 + $0x70] sm:$0xff]  ;;  %v153_v52 = vld [vmem:[%s544_s18 + $0x78] sm:$0xff]  ;;  %v154_v56 = vld [vmem:[%s544_s18 + $0x80] sm:$0xff] }
  0x2c   : > { %v221_v50 = vmul.f32 %v151_v44, %v151_v44  ;;  %v222_v54 = vmul.f32 %v152_v48, %v152_v48  ;;  %v223_v58 = vmul.f32 %v153_v52, %v153_v52  ;;  %v155_v60 = vld [vmem:[%s544_s18 + $0x88] sm:$0xff]  ;;  %v224_v62 = vmul.f32 %v154_v56, %v154_v56  ;;  %v156_v0 = vld [vmem:[%s544_s18 + $0x90] sm:$0xff]  ;;  %v157_v4 = vld [vmem:[%s544_s18 + $0x98] sm:$0xff] }
  0x2d   : > { %v173_v17 = vadd.f32 %v172_v13, %v142_v8  ;;  %v242_v19 = vadd.f32 %v241_v15, %v211_v10  ;;  %v225_v2 = vmul.f32 %v155_v60, %v155_v60  ;;  %v226_v6 = vmul.f32 %v156_v0, %v156_v0  ;;  %v158_v8 = vld [vmem:[%s544_s18 + $0xa0] sm:$0xff] }
  0x2e   : > { %v227_v10 = vmul.f32 %v157_v4, %v157_v4 }
  0x2f   : > { %v174_v21 = vadd.f32 %v173_v17, %v143_v12  ;;  %v243_v23 = vadd.f32 %v242_v19, %v212_v14  ;;  %v159_v12 = vld [vmem:[%s544_s18 + $0xa8] sm:$0xff]  ;;  %v228_v14 = vmul.f32 %v158_v8, %v158_v8 }
  0x31   : > { %v175_v25 = vadd.f32 %v174_v21, %v144_v16  ;;  %v244_v27 = vadd.f32 %v243_v23, %v213_v18  ;;  %v160_v16 = vld [vmem:[%s544_s18 + $0xb0] sm:$0xff]  ;;  %v229_v18 = vmul.f32 %v159_v12, %v159_v12 }
  0x33   : > { %v176_v29 = vadd.f32 %v175_v25, %v145_v20  ;;  %v245_v31 = vadd.f32 %v244_v27, %v214_v22  ;;  %v161_v20 = vld [vmem:[%s544_s18 + $0xb8] sm:$0xff]  ;;  %v230_v22 = vmul.f32 %v160_v16, %v160_v16 }
  0x35   : > { %v177_v33 = vadd.f32 %v176_v29, %v146_v24  ;;  %v246_v35 = vadd.f32 %v245_v31, %v215_v26  ;;  %v162_v24 = vld [vmem:[%s544_s18 + $0xc0] sm:$0xff]  ;;  %v231_v26 = vmul.f32 %v161_v20, %v161_v20 }
  0x37   : > { %v178_v37 = vadd.f32 %v177_v33, %v147_v28  ;;  %v247_v39 = vadd.f32 %v246_v35, %v216_v30  ;;  %v163_v28 = vld [vmem:[%s544_s18 + $0xc8] sm:$0xff]  ;;  %v232_v30 = vmul.f32 %v162_v24, %v162_v24 }
  0x39   : > { %v179_v41 = vadd.f32 %v178_v37, %v148_v32  ;;  %v248_v43 = vadd.f32 %v247_v39, %v217_v34  ;;  %v164_v32 = vld [vmem:[%s544_s18 + $0xd0] sm:$0xff]  ;;  %v233_v34 = vmul.f32 %v163_v28, %v163_v28 }
  0x3b   : > { %v180_v45 = vadd.f32 %v179_v41, %v149_v36  ;;  %v249_v47 = vadd.f32 %v248_v43, %v218_v38  ;;  %v165_v36 = vld [vmem:[%s544_s18 + $0xd8] sm:$0xff]  ;;  %v234_v38 = vmul.f32 %v164_v32, %v164_v32 }
  0x3d   : > { %v181_v49 = vadd.f32 %v180_v45, %v150_v40  ;;  %v250_v51 = vadd.f32 %v249_v47, %v219_v42  ;;  %v166_v40 = vld [vmem:[%s544_s18 + $0xe0] sm:$0xff]  ;;  %v235_v42 = vmul.f32 %v165_v36, %v165_v36 }
  0x3f   : > { %v182_v53 = vadd.f32 %v181_v49, %v151_v44  ;;  %v251_v55 = vadd.f32 %v250_v51, %v220_v46  ;;  %v167_v44 = vld [vmem:[%s544_s18 + $0xe8] sm:$0xff]  ;;  %v236_v46 = vmul.f32 %v166_v40, %v166_v40 }
  0x41   : > { %v183_v57 = vadd.f32 %v182_v53, %v152_v48  ;;  %v252_v59 = vadd.f32 %v251_v55, %v221_v50  ;;  %v168_v48 = vld [vmem:[%s544_s18 + $0xf0] sm:$0xff]  ;;  %v237_v50 = vmul.f32 %v167_v44, %v167_v44 }
  0x43   : > { %v184_v61 = vadd.f32 %v183_v57, %v153_v52  ;;  %v253_v63 = vadd.f32 %v252_v59, %v222_v54  ;;  %v169_v52 = vld [vmem:[%s544_s18 + $0xf8] sm:$0xff]  ;;  %v238_v54 = vmul.f32 %v168_v48, %v168_v48 }
  0x44   : > { %v239_v57 = vmul.f32 %v169_v52, %v169_v52 }
  0x45   : > { %v185_v1 = vadd.f32 %v184_v61, %v154_v56  ;;  %v254_v3 = vadd.f32 %v253_v63, %v223_v58 }
  0x47   : > { %v186_v5 = vadd.f32 %v185_v1, %v155_v60  ;;  %v255_v7 = vadd.f32 %v254_v3, %v224_v62 }
  0x49   : > { %v187_v9 = vadd.f32 %v186_v5, %v156_v0  ;;  %v256_v11 = vadd.f32 %v255_v7, %v225_v2 }
  0x4b   : > { %v188_v13 = vadd.f32 %v187_v9, %v157_v4  ;;  %v257_v15 = vadd.f32 %v256_v11, %v226_v6 }
  0x4d   : > { %v189_v17 = vadd.f32 %v188_v13, %v158_v8  ;;  %v258_v19 = vadd.f32 %v257_v15, %v227_v10 }
  0x4f   : > { %v190_v21 = vadd.f32 %v189_v17, %v159_v12  ;;  %v259_v23 = vadd.f32 %v258_v19, %v228_v14 }
  0x51   : > { %v191_v25 = vadd.f32 %v190_v21, %v160_v16  ;;  %v260_v27 = vadd.f32 %v259_v23, %v229_v18 }
  0x53   : > { %v192_v29 = vadd.f32 %v191_v25, %v161_v20  ;;  %v261_v31 = vadd.f32 %v260_v27, %v230_v22 }
  0x55   : > { %v193_v33 = vadd.f32 %v192_v29, %v162_v24  ;;  %v262_v35 = vadd.f32 %v261_v31, %v231_v26 }
  0x57   : > { %v194_v37 = vadd.f32 %v193_v33, %v163_v28  ;;  %v263_v39 = vadd.f32 %v262_v35, %v232_v30 }
  0x59   : > { %v195_v41 = vadd.f32 %v194_v37, %v164_v32  ;;  %v264_v43 = vadd.f32 %v263_v39, %v233_v34 }
  0x5b   : > { %v196_v45 = vadd.f32 %v195_v41, %v165_v36  ;;  %v265_v47 = vadd.f32 %v264_v43, %v234_v38 }
  0x5d   : > { %v197_v49 = vadd.f32 %v196_v45, %v166_v40  ;;  %v266_v51 = vadd.f32 %v265_v47, %v235_v42 }
  0x5f   : > { %v198_v53 = vadd.f32 %v197_v49, %v167_v44  ;;  %v267_v55 = vadd.f32 %v266_v51, %v236_v46 }
  0x61   : > { %v199_v56 = vadd.f32 %v198_v53, %v168_v48  ;;  %v268_v58 = vadd.f32 %v267_v55, %v237_v50 }
  0x63   : > { %v200_v59 = vadd.f32 %v199_v56, %v169_v52  ;;  %v269_v60 = vadd.f32 %v268_v58, %v238_v54 }
  0x65   : > { %v201_v61 = vrot.slane %v200_v59, 4  ;;  %v270_v62 = vadd.f32 %v269_v60, %v239_v57 }
  0x67   : > { %v202_v63 = vadd.f32 %v201_v61, %v200_v59  ;;  %v271_v0 = vrot.slane %v270_v62, 4 }
  0x69   : > { %v203_v1 = vrot.slane %v202_v63, 2  ;;  %v272_v2 = vadd.f32 %v271_v0, %v270_v62 }
  0x6b   : > { %v204_v3 = vadd.f32 %v203_v1, %v202_v63  ;;  %v273_v4 = vrot.slane %v272_v2, 2 }
  0x6d   : > { %v205_v5 = vrot.slane %v204_v3, 1  ;;  %v274_v6 = vadd.f32 %v273_v4, %v272_v2 }
  0x6f   : > { %v206_v7 = vadd.f32 %v205_v5, %v204_v3  ;;  %v275_v8 = vrot.slane %v274_v6, 1 }
  0x71   : > { %207 = vst [vmem:[%s137_s20] sm:$0x1] %v206_v7  ;;  %v276_v9 = vadd.f32 %v275_v8, %v274_v6 }
  0x73   : > { %277 = vst [vmem:[%s137_s20 + $0x1] sm:$0x1] %v276_v9 }
  0x74 PF: > { %p11_p7 = scmp.ge.s32.totalorder %s496_s11, 4   ;;  %s605_s6 = smov %s452_s7 }
  0x75   : > { %s606_s7 = smov %s456_s8  ;;  %s607_s8 = smov %s506_s14 }
  0x76   : > { %s608_s9 = smov %s496_s11  ;;  %13 = sbr.rel (!%p11_p7) target bundleno = 3 (0x3), region = 64 }
  0x7b   :  { %297 = vsyncpa [#allocation3], 1 }
  0x7c   :  { %299 = vsyncpa [#allocation3 + $0x1], 1 }

// kernel: resblock_forward.4
= control target key start
LH: loop header
LB: loop body
LE: loop exit
PB: predicated region body
PF: predicated region fallthrough
CT: control target
= control target key end

     0   :  { %s1179_s15 = smov 0   ;;  %s1737_s0 = inlined_call_operand.vmem [shape: f32[512,128], index: 0, kind: input, shape index: {}]   ;;  %s1738_s1 = inlined_call_operand.vmem [shape: f32[2,128], index: 1, kind: input, shape index: {}]   ;;  %s1739_s2 = inlined_call_operand.vmem [shape: bf16[128,256], index: 2, kind: input, shape index: {}]   ;;  %s1740_s3 = inlined_call_operand.vmem [shape: bf16[512,256], index: 3, kind: output, shape index: {0}]   ;;  %s1741_s4 = inlined_call_operand.vmem [shape: f32[2,2,256], index: 4, kind: output, shape index: {1}]  }
   0x1 LB: > { %s1185_s16 = sadd.s32 4294967295, %s1152_s15   ;;  %p1027_p0 = scmp.ge.s32.totalorder %s1152_s15, 1  ;;  %s1152_s15 = sphi %s1179_s15, %s15_s15  }
   0x2   : > { %p166_p1 = scmp.lt.s32.totalorder %s1152_s15, 3 }
   0x4   : > { %p167_p2 = pnand %p1027_p0, %p166_p1 }
   0x5   : > { %s1028_s25 = sshll.u32 (!%p167_p2), %s1185_s16, 5  ;;  %p211_p4 = scmp.lt.s32.totalorder (!%p167_p2), %s1185_s16, 1 }
   0x6   : > { %170 = sbr.rel (%p167_p2) target bundleno = 344 (0x158), region = 32  ;;  %p199_p3 = scmp.lt.s32.totalorder (!%p167_p2), %s1028_s25, 63 }
   0xb   : > { %v1093_v0 = vld [vmem:[%s1739_s2 + $0x70] sm:$0xf]  ;;  %v1119_v1 = vld [vmem:[%s1739_s2 + $0x74] sm:$0xf0]  ;;  %v1118_v2 = vld [vmem:[%s1739_s2 + $0x74] sm:$0xf] }
   0xc   : > { %v1094_v3 = vor.u32 %v1119_v1, %v1093_v0  ;;  %v1095_v4 = vld [vmem:[%s1739_s2 + $0x78] sm:$0xf0]  ;;  %v1085_v5 = vld [vmem:[%s1739_s2 + $0x60] sm:$0xf]  ;;  %v1117_v6 = vld [vmem:[%s1739_s2 + $0x64] sm:$0xf0] }
   0xd   : > { %v1098_v7 = vor.u32 %v1118_v2, %v1095_v4  ;;  %v1116_v8 = vld [vmem:[%s1739_s2 + $0x64] sm:$0xf]  ;;  %v1087_v9 = vld [vmem:[%s1739_s2 + $0x68] sm:$0xf0]  ;;  %v1086_v10 = vor.u32 %v1117_v6, %v1085_v5  ;;  %v1077_v12 = vld [vmem:[%s1739_s2 + $0x50] sm:$0xf] }
   0xe   : > { %460 = vmatpush.bf16.msra.mxu0 %v1094_v3  ;;  %1120 = vmatpush.bf16.msra.mxu2 %v1094_v3  ;;  %v1090_v11 = vor.u32 %v1116_v8, %v1087_v9  ;;  %v1115_v13 = vld [vmem:[%s1739_s2 + $0x54] sm:$0xf0]  ;;  %v1114_v14 = vld [vmem:[%s1739_s2 + $0x54] sm:$0xf]  ;;  %v1079_v15 = vld [vmem:[%s1739_s2 + $0x58] sm:$0xf0] }
   0xf   : > { %549 = vmatpush.bf16.msra.mxu1 %v1098_v7  ;;  %1128 = vmatpush.bf16.msra.mxu3 %v1098_v7  ;;  %v1078_v16 = vor.u32 %v1115_v13, %v1077_v12  ;;  %v1082_v17 = vor.u32 %v1114_v14, %v1079_v15  ;;  %v1069_v18 = vld [vmem:[%s1739_s2 + $0x40] sm:$0xf]  ;;  %v1113_v19 = vld [vmem:[%s1739_s2 + $0x44] sm:$0xf0]  ;;  %v1112_v20 = vld [vmem:[%s1739_s2 + $0x44] sm:$0xf] }
  0x10   : > { %v1071_v21 = vld [vmem:[%s1739_s2 + $0x48] sm:$0xf0]  ;;  %v1070_v22 = vor.u32 %v1113_v19, %v1069_v18  ;;  %v1061_v24 = vld [vmem:[%s1739_s2 + $0x30] sm:$0xf]  ;;  %v1111_v25 = vld [vmem:[%s1739_s2 + $0x34] sm:$0xf0] }
  0x11   : > { %v1074_v23 = vor.u32 %v1112_v20, %v1071_v21  ;;  %v1110_v26 = vld [vmem:[%s1739_s2 + $0x34] sm:$0xf]  ;;  %v1063_v27 = vld [vmem:[%s1739_s2 + $0x38] sm:$0xf0]  ;;  %s1743_s25 = smov (!%p199_p3, %s1028_s25), 63  ;;  %v1062_v29 = vor.u32 %v1111_v25, %v1061_v24  ;;  %s1745_s16 = smov (!%p211_p4, %s1185_s16), 1 }
  0x12   : > { %461 = vmatpush.bf16.msra.mxu0 %v1086_v10  ;;  %1121 = vmatpush.bf16.msra.mxu2 %v1086_v10  ;;  %v1255_v28 = vld [vmem:[%s1738_s1] ss:$0 sm:$0xff]  ;;  %s1029_s10 = sshll.u32 %s1743_s25, 3  ;;  %v1066_v30 = vor.u32 %v1110_v26, %v1063_v27  ;;  %v1109_v32 = vld [vmem:[%s1739_s2 + $0x24] sm:$0xf0]  ;;  %s1103_s25 = sshll.u32 %s1745_s16, 2 }
  0x13   : > { %550 = vmatpush.bf16.msra.mxu1 %v1090_v11  ;;  %1129 = vmatpush.bf16.msra.mxu3 %v1090_v11  ;;  %v1053_v31 = vld [vmem:[%s1739_s2 + $0x20] sm:$0xf]  ;;  %v1108_v33 = vld [vmem:[%s1739_s2 + $0x24] sm:$0xf]  ;;  %s1272_s21 = scalar_lea.vmem %s1737_s0, %s1029_s10  ;;  %v1055_v34 = vld [vmem:[%s1739_s2 + $0x28] sm:$0xf0]  ;;  %s1407_s22 = scalar_lea.vmem %s1740_s3, %s1029_s10 }
  0x14   : > { %v216_v35 = vld [vmem:[%s1272_s21] sm:$0xff]  ;;  %v217_v36 = vld [vmem:[%s1272_s21 + $0x8] sm:$0xff]  ;;  %v1054_v42 = vor.u32 %v1109_v32, %v1053_v31  ;;  %v1058_v45 = vor.u32 %v1108_v33, %v1055_v34  ;;  %v1045_v46 = vld [vmem:[%s1739_s2 + $0x10] sm:$0xf]  ;;  %vm779_vm0 = vcmask 1040384   ;;  %s215_s24 = scalar_lea.vmem %s1741_s4, %s1103_s25 }
  0x15   : > { %v250_v37 = vmul.f32 %v1255_v28, %v216_v35  ;;  %v251_v38 = vmul.f32 %v1255_v28, %v217_v36  ;;  %v1284_v39 = vld [vmem:[%s1738_s1 + $0x1] ss:$0 sm:$0xff]  ;;  %v233_v41 = vld [vmem:[%s1272_s21 + $0x88] sm:$0xff]  ;;  %v1107_v47 = vld [vmem:[%s1739_s2 + $0x14] sm:$0xf0] }
  0x16   : > { %462 = vmatpush.bf16.msra.mxu0 %v1078_v16  ;;  %1122 = vmatpush.bf16.msra.mxu2 %v1078_v16  ;;  %v232_v40 = vld [vmem:[%s1272_s21 + $0x80] sm:$0xff]  ;;  %v267_v44 = vmul.f32 %v1255_v28, %v233_v41  ;;  %v1106_v48 = vld [vmem:[%s1739_s2 + $0x14] sm:$0xf]  ;;  %v1047_v49 = vld [vmem:[%s1739_s2 + $0x18] sm:$0xf0]  ;;  %v1046_v54 = vor.u32 %v1107_v47, %v1045_v46 }
  0x17   : > { %551 = vmatpush.bf16.msra.mxu1 %v1082_v17  ;;  %1130 = vmatpush.bf16.msra.mxu3 %v1082_v17  ;;  %v266_v43 = vmul.f32 %v1255_v28, %v232_v40  ;;  %v284_v50 = vadd.f32 %v1284_v39, %v250_v37  ;;  %v285_v51 = vadd.f32 %v1284_v39, %v251_v38  ;;  %v1037_v56 = vld [vmem:[%s1739_s2] sm:$0xf]  ;;  %v1105_v57 = vld [vmem:[%s1739_s2 + $0x4] sm:$0xf0]  ;;  %v1104_v58 = vld [vmem:[%s1739_s2 + $0x4] sm:$0xf] }
  0x18   : > { %v301_v53 = vadd.f32 %v1284_v39, %v267_v44  ;;  %v1050_v55 = vor.u32 %v1106_v48, %v1047_v49  ;;  %v1039_v59 = vld [vmem:[%s1739_s2 + $0x8] sm:$0xf0]  ;;  %v1038_v0 = vor.u32 %v1105_v57, %v1037_v56  ;;  %v218_v3 = vld [vmem:[%s1272_s21 + $0x10] sm:$0xff]  ;;  %v219_v5 = vld [vmem:[%s1272_s21 + $0x18] sm:$0xff] }
  0x19   : > { %v300_v52 = vadd.f32 %v1284_v39, %v266_v43  ;;  %v316_v60 = vmax.f32 %v284_v50, 0.0  ;;  %v317_v61 = vmax.f32 %v285_v51, 0.0  ;;  %v1042_v1 = vor.u32 %v1104_v58, %v1039_v59  ;;  %v234_v6 = vld [vmem:[%s1272_s21 + $0x90] sm:$0xff]  ;;  %v235_v7 = vld [vmem:[%s1272_s21 + $0x98] sm:$0xff]  ;;  %v220_v21 = vld [vmem:[%s1272_s21 + $0x20] sm:$0xff] }
  0x1a   : > { %463 = vmatpush.bf16.msra.mxu0 %v1070_v22  ;;  %1123 = vmatpush.bf16.msra.mxu2 %v1070_v22  ;;  %v333_v63 = vmax.f32 %v301_v53, 0.0  ;;  %v252_v8 = vmul.f32 %v1255_v28, %v218_v3  ;;  %v253_v9 = vmul.f32 %v1255_v28, %v219_v5  ;;  %v268_v10 = vmul.f32 %v1255_v28, %v234_v6  ;;  %v236_v24 = vld [vmem:[%s1272_s21 + $0xa0] sm:$0xff]  ;;  %v237_v25 = vld [vmem:[%s1272_s21 + $0xa8] sm:$0xff]  ;;  %v222_v41 = vld [vmem:[%s1272_s21 + $0x30] sm:$0xff] }
  0x1b   : > { %552 = vmatpush.bf16.msra.mxu1 %v1074_v23  ;;  %1131 = vmatpush.bf16.msra.mxu3 %v1074_v23  ;;  %v332_v62 = vmax.f32 %v300_v52, 0.0  ;;  %v348_v2 = vpack.c.bf16 %v317_v61, %v316_v60  ;;  %v269_v11 = vmul.f32 %v1255_v28, %v235_v7  ;;  %v221_v23 = vld [vmem:[%s1272_s21 + $0x28] sm:$0xff]  ;;  %v254_v26 = vmul.f32 %v1255_v28, %v220_v21  ;;  %v223_v43 = vld [vmem:[%s1272_s21 + $0x38] sm:$0xff]  ;;  %v238_v44 = vld [vmem:[%s1272_s21 + $0xb0] sm:$0xff] }
  0x1c   : > { %v286_v12 = vadd.f32 %v1284_v39, %v252_v8  ;;  %v287_v13 = vadd.f32 %v1284_v39, %v253_v9  ;;  %v302_v14 = vadd.f32 %v1284_v39, %v268_v10  ;;  %v255_v27 = vmul.f32 %v1255_v28, %v221_v23  ;;  %v224_v59 = vld [vmem:[%s1272_s21 + $0x40] sm:$0xff]  ;;  %v225_v61 = vld [vmem:[%s1272_s21 + $0x48] sm:$0xff] }
  0x1d   : > { %v356_v4 = vpack.c.bf16 %v333_v63, %v332_v62  ;;  %v303_v15 = vadd.f32 %v1284_v39, %v269_v11  ;;  %v288_v31 = vadd.f32 %v1284_v39, %v254_v26  ;;  %v256_v46 = vmul.f32 %v1255_v28, %v222_v41  ;;  %v240_v62 = vld [vmem:[%s1272_s21 + $0xc0] sm:$0xff]  ;;  %v241_v63 = vld [vmem:[%s1272_s21 + $0xc8] sm:$0xff] }
  0x1e   : > { %464 = vmatpush.bf16.msra.mxu0 %v1062_v29  ;;  %1124 = vmatpush.bf16.msra.mxu2 %v1062_v29  ;;  %v318_v16 = vmax.f32 %v286_v12, 0.0  ;;  %v319_v17 = vmax.f32 %v287_v13, 0.0  ;;  %v334_v18 = vmax.f32 %v302_v14, 0.0  ;;  %v270_v29 = vmul.f32 %v1255_v28, %v236_v24  ;;  %v226_v13 = vld [vmem:[%s1272_s21 + $0x50] sm:$0xff] }
  0x1f   : > { %553 = vmatpush.bf16.msra.mxu1 %v1066_v30  ;;  %1132 = vmatpush.bf16.msra.mxu3 %v1066_v30  ;;  %v335_v19 = vmax.f32 %v303_v15, 0.0  ;;  %v271_v30 = vmul.f32 %v1255_v28, %v237_v25  ;;  %v289_v32 = vadd.f32 %v1284_v39, %v255_v27  ;;  %v320_v35 = vmax.f32 %v288_v31, 0.0  ;;  %v227_v15 = vld [vmem:[%s1272_s21 + $0x58] sm:$0xff] }
  0x20   : > { %v349_v20 = vpack.c.bf16 %v319_v17, %v318_v16  ;;  %v304_v33 = vadd.f32 %v1284_v39, %v270_v29  ;;  %v257_v47 = vmul.f32 %v1255_v28, %v223_v43  ;;  %v272_v48 = vmul.f32 %v1255_v28, %v238_v44  ;;  %v242_v16 = vld [vmem:[%s1272_s21 + $0xd0] sm:$0xff]  ;;  %v243_v17 = vld [vmem:[%s1272_s21 + $0xd8] sm:$0xff] }
  0x21   : > { %v357_v22 = vpack.c.bf16 %v335_v19, %v334_v18  ;;  %v305_v34 = vadd.f32 %v1284_v39, %v271_v30  ;;  %v321_v36 = vmax.f32 %v289_v32, 0.0  ;;  %v290_v50 = vadd.f32 %v1284_v39, %v256_v46  ;;  %v228_v32 = vld [vmem:[%s1272_s21 + $0x60] sm:$0xff] }
  0x22   : > { %465 = vmatpush.bf16.msra.mxu0 %v1054_v42  ;;  %1125 = vmatpush.bf16.msra.mxu2 %v1054_v42  ;;  %v336_v37 = vmax.f32 %v304_v33, 0.0  ;;  %v291_v51 = vadd.f32 %v1284_v39, %v257_v47  ;;  %v306_v52 = vadd.f32 %v1284_v39, %v272_v48  ;;  %v275_v3 = vmul.f32 %v1255_v28, %v241_v63 }
  0x23   : > { %554 = vmatpush.bf16.msra.mxu1 %v1058_v45  ;;  %1133 = vmatpush.bf16.msra.mxu3 %v1058_v45  ;;  %v337_v38 = vmax.f32 %v305_v34, 0.0  ;;  %v350_v40 = vpack.c.bf16 %v321_v36, %v320_v35  ;;  %v239_v45 = vld [vmem:[%s1272_s21 + $0xb8] sm:$0xff]  ;;  %v260_v18 = vmul.f32 %v1255_v28, %v226_v13  ;;  %v261_v19 = vmul.f32 %v1255_v28, %v227_v15  ;;  %v229_v34 = vld [vmem:[%s1272_s21 + $0x68] sm:$0xff]  ;;  %v244_v35 = vld [vmem:[%s1272_s21 + $0xe0] sm:$0xff] }
  0x24   : > { %v273_v49 = vmul.f32 %v1255_v28, %v239_v45  ;;  %v338_v56 = vmax.f32 %v306_v52, 0.0  ;;  %v309_v7 = vadd.f32 %v1284_v39, %v275_v3  ;;  %v277_v21 = vmul.f32 %v1255_v28, %v243_v17  ;;  %v245_v36 = vld [vmem:[%s1272_s21 + $0xe8] sm:$0xff] }
  0x25   : > { %v358_v42 = vpack.c.bf16 %v337_v38, %v336_v37  ;;  %v295_v23 = vadd.f32 %v1284_v39, %v261_v19  ;;  %v262_v37 = vmul.f32 %v1255_v28, %v228_v32  ;;  %v263_v38 = vmul.f32 %v1255_v28, %v229_v34 }
  0x26   : > { %466 = vmatpush.bf16.msra.mxu0 %v1046_v54  ;;  %1126 = vmatpush.bf16.msra.mxu2 %v1046_v54  ;;  %v307_v53 = vadd.f32 %v1284_v39, %v273_v49  ;;  %v322_v54 = vmax.f32 %v290_v50, 0.0  ;;  %v341_v11 = vmax.f32 %v309_v7, 0.0  ;;  %v311_v25 = vadd.f32 %v1284_v39, %v277_v21 }
  0x27   : > { %555 = vmatpush.bf16.msra.mxu1 %v1050_v55  ;;  %1134 = vmatpush.bf16.msra.mxu3 %v1050_v55  ;;  %v323_v55 = vmax.f32 %v291_v51, 0.0  ;;  %v327_v27 = vmax.f32 %v295_v23, 0.0  ;;  %v279_v41 = vmul.f32 %v1255_v28, %v245_v36  ;;  %v297_v43 = vadd.f32 %v1284_v39, %v263_v38  ;;  %v230_v51 = vld [vmem:[%s1272_s21 + $0x70] sm:$0xff] }
  0x28   : > { %v339_v57 = vmax.f32 %v307_v53, 0.0  ;;  %v343_v30 = vmax.f32 %v311_v25, 0.0  ;;  %v231_v53 = vld [vmem:[%s1272_s21 + $0x78] sm:$0xff] }
  0x29   : > { %v351_v58 = vpack.c.bf16 %v323_v55, %v322_v54  ;;  %v313_v45 = vadd.f32 %v1284_v39, %v279_v41  ;;  %v329_v47 = vmax.f32 %v297_v43, 0.0  ;;  %v246_v54 = vld [vmem:[%s1272_s21 + $0xf0] sm:$0xff]  ;;  %v247_v55 = vld [vmem:[%s1272_s21 + $0xf8] sm:$0xff] }
  0x2a   : > { %467 = vmatpush.bf16.msra.mxu0 %v1038_v0  ;;  %1127 = vmatpush.bf16.msra.mxu2 %v1038_v0  ;;  %v359_v60 = vpack.c.bf16 %v339_v57, %v338_v56  ;;  %v258_v0 = vmul.f32 %v1255_v28, %v224_v59  ;;  %v264_v56 = vmul.f32 %v1255_v28, %v230_v51 }
  0x2b   : > { %556 = vmatpush.bf16.msra.mxu1 %v1042_v1  ;;  %1135 = vmatpush.bf16.msra.mxu3 %v1042_v1  ;;  %v259_v1 = vmul.f32 %v1255_v28, %v225_v61  ;;  %v345_v49 = vmax.f32 %v313_v45, 0.0  ;;  %v265_v57 = vmul.f32 %v1255_v28, %v231_v53  ;;  %v281_v59 = vmul.f32 %v1255_v28, %v247_v55 }
  0x2d   : > { %468 = vmatmul.bf16.vlgmr.msra.gmra.mxu0 %v348_v2  ;;  %508 = vmatmul.bf16.vlgmr.msra.gmra.mxu2 %v356_v4  ;;  %v293_v5 = vadd.f32 %v1284_v39, %v259_v1  ;;  %v299_v61 = vadd.f32 %v1284_v39, %v265_v57  ;;  %v315_v63 = vadd.f32 %v1284_v39, %v281_v59 }
  0x2e   : > { %557 = vmatmul.bf16.vlgmr.msra.gmra.mxu1 %v348_v2  ;;  %597 = vmatmul.bf16.vlgmr.msra.gmra.mxu3 %v356_v4  ;;  %v274_v2 = vmul.f32 %v1255_v28, %v240_v62  ;;  %v292_v4 = vadd.f32 %v1284_v39, %v258_v0 }
  0x2f   : > { %v325_v9 = vmax.f32 %v293_v5, 0.0  ;;  %v331_v1 = vmax.f32 %v299_v61, 0.0  ;;  %v347_v3 = vmax.f32 %v315_v63, 0.0 }
  0x30   : > { %v308_v6 = vadd.f32 %v1284_v39, %v274_v2  ;;  %v324_v8 = vmax.f32 %v292_v4, 0.0 }
  0x32   : > { %v340_v10 = vmax.f32 %v308_v6, 0.0  ;;  %v352_v12 = vpack.c.bf16 %v325_v9, %v324_v8 }
  0x34   : > { %v360_v14 = vpack.c.bf16 %v341_v11, %v340_v10 }
  0x3d   : > { %473 = vmatmul.bf16.gmra.mxu0 %v349_v20  ;;  %513 = vmatmul.bf16.gmra.mxu2 %v357_v22 }
  0x3e   : > { %562 = vmatmul.bf16.gmra.mxu1 %v349_v20  ;;  %602 = vmatmul.bf16.gmra.mxu3 %v357_v22  ;;  %v276_v20 = vmul.f32 %v1255_v28, %v242_v16  ;;  %v294_v22 = vadd.f32 %v1284_v39, %v260_v18 }
  0x40   : > { %v310_v24 = vadd.f32 %v1284_v39, %v276_v20  ;;  %v326_v26 = vmax.f32 %v294_v22, 0.0 }
  0x42   : > { %v342_v29 = vmax.f32 %v310_v24, 0.0  ;;  %v353_v31 = vpack.c.bf16 %v327_v27, %v326_v26 }
  0x44   : > { %v361_v33 = vpack.c.bf16 %v343_v30, %v342_v29 }
  0x4d   : > { %478 = vmatmul.bf16.gmra.mxu0 %v350_v40  ;;  %518 = vmatmul.bf16.gmra.mxu2 %v358_v42 }
  0x4e   : > { %567 = vmatmul.bf16.gmra.mxu1 %v350_v40  ;;  %607 = vmatmul.bf16.gmra.mxu3 %v358_v42  ;;  %v278_v40 = vmul.f32 %v1255_v28, %v244_v35  ;;  %v296_v42 = vadd.f32 %v1284_v39, %v262_v37 }
  0x50   : > { %v312_v44 = vadd.f32 %v1284_v39, %v278_v40  ;;  %v328_v46 = vmax.f32 %v296_v42, 0.0 }
  0x52   : > { %v344_v48 = vmax.f32 %v312_v44, 0.0  ;;  %v354_v50 = vpack.c.bf16 %v329_v47, %v328_v46 }
  0x54   : > { %v362_v52 = vpack.c.bf16 %v345_v49, %v344_v48 }
  0x5d   : > { %483 = vmatmul.bf16.gmra.mxu0 %v351_v58  ;;  %523 = vmatmul.bf16.gmra.mxu2 %v359_v60 }
  0x5e   : > { %572 = vmatmul.bf16.gmra.mxu1 %v351_v58  ;;  %612 = vmatmul.bf16.gmra.mxu3 %v359_v60  ;;  %v280_v58 = vmul.f32 %v1255_v28, %v246_v54  ;;  %v298_v60 = vadd.f32 %v1284_v39, %v264_v56 }
  0x60   : > { %v314_v62 = vadd.f32 %v1284_v39, %v280_v58  ;;  %v330_v0 = vmax.f32 %v298_v60, 0.0 }
  0x62   : > { %v346_v2 = vmax.f32 %v314_v62, 0.0  ;;  %v355_v4 = vpack.c.bf16 %v331_v1, %v330_v0 }
  0x64   : > { %v363_v5 = vpack.c.bf16 %v347_v3, %v346_v2 }
  0x6d   : > { %488 = vmatmul.bf16.gmra.mxu0 %v352_v12  ;;  %528 = vmatmul.bf16.gmra.mxu2 %v360_v14 }
  0x6e   : > { %577 = vmatmul.bf16.gmra.mxu1 %v352_v12  ;;  %617 = vmatmul.bf16.gmra.mxu3 %v360_v14 }
  0x7d   : > { %493 = vmatmul.bf16.gmra.mxu0 %v353_v31  ;;  %533 = vmatmul.bf16.gmra.mxu2 %v361_v33 }
  0x7e   : > { %582 = vmatmul.bf16.gmra.mxu1 %v353_v31  ;;  %622 = vmatmul.bf16.gmra.mxu3 %v361_v33 }
  0x8d   : > { %498 = vmatmul.bf16.gmra.mxu0 %v354_v50  ;;  %538 = vmatmul.bf16.gmra.mxu2 %v362_v52 }
  0x8e   : > { %587 = vmatmul.bf16.gmra.mxu1 %v354_v50  ;;  %627 = vmatmul.bf16.gmra.mxu3 %v362_v52 }
  0x9d   : > { %503 = vmatmul.bf16.gmra.mxu0 %v355_v4  ;;  %543 = vmatmul.bf16.gmra.mxu2 %v363_v5 }
  0x9e   : > { %592 = vmatmul.bf16.gmra.mxu1 %v355_v4  ;;  %632 = vmatmul.bf16.gmra.mxu3 %v363_v5 }
  0xaa   : > { %v469_v28 = vpop.f32.mrf.mxu0 }
  0xab   : > { %v558_v39 = vpop.f32.mrf.mxu1  ;;  %v787_v11 = vmul.f32 %v469_v28, %v469_v28 }
  0xac   : > { %v638_v6 = vpack.c.bf16 %v558_v39, %v469_v28  ;;  %v788_v15 = vmul.f32 %v558_v39, %v558_v39 }
  0xae   : > { %670 = vst [vmem:[%s1407_s22] sm:$0xff] %v638_v6 }
  0xb0   : > { %v1410_v7 = vpop.f32.mrf.mxu2 }
  0xb1   : > { %v1412_v8 = vpop.f32.mrf.mxu3 }
  0xb2   : > { %v471_v9 = vpop.f32.mrf.mxu0  ;;  %v654_v10 = vpack.c.bf16 %v1412_v8, %v1410_v7 }
  0xb3   : > { %v702_v12 = vadd.f32 %v471_v9, %v469_v28  ;;  %v789_v13 = vmul.f32 %v471_v9, %v471_v9  ;;  %v560_v14 = vpop.f32.mrf.mxu1 }
  0xb4   : > { %v639_v16 = vpack.c.bf16 %v560_v14, %v471_v9  ;;  %v739_v17 = vadd.f32 %v560_v14, %v558_v39  ;;  %v790_v18 = vmul.f32 %v560_v14, %v560_v14  ;;  %686 = vst [vmem:[%s1407_s22 + $0x80] sm:$0xff] %v654_v10 }
  0xb5   : > { %v851_v19 = vadd.f32 %v789_v13, %v787_v11 }
  0xb6   : > { %671 = vst [vmem:[%s1407_s22 + $0x8] sm:$0xff] %v639_v16  ;;  %v888_v20 = vadd.f32 %v790_v18, %v788_v15 }
  0xb8   : > { %v1418_v21 = vpop.f32.mrf.mxu2 }
  0xb9   : > { %v1420_v22 = vpop.f32.mrf.mxu3 }
  0xba   : > { %v474_v23 = vpop.f32.mrf.mxu0  ;;  %v655_v24 = vpack.c.bf16 %v1420_v22, %v1418_v21 }
  0xbb   : > { %v703_v25 = vadd.f32 %v702_v12, %v474_v23  ;;  %v791_v26 = vmul.f32 %v474_v23, %v474_v23  ;;  %v563_v27 = vpop.f32.mrf.mxu1 }
  0xbc   : > { %v640_v29 = vpack.c.bf16 %v563_v27, %v474_v23  ;;  %v740_v30 = vadd.f32 %v739_v17, %v563_v27  ;;  %v792_v31 = vmul.f32 %v563_v27, %v563_v27  ;;  %687 = vst [vmem:[%s1407_s22 + $0x88] sm:$0xff] %v655_v24 }
  0xbd   : > { %v852_v32 = vadd.f32 %v851_v19, %v791_v26 }
  0xbe   : > { %672 = vst [vmem:[%s1407_s22 + $0x10] sm:$0xff] %v640_v29  ;;  %v889_v33 = vadd.f32 %v888_v20, %v792_v31 }
  0xc0   : > { %v1426_v34 = vpop.f32.mrf.mxu2 }
  0xc1   : > { %v1428_v35 = vpop.f32.mrf.mxu3 }
  0xc2   : > { %v476_v36 = vpop.f32.mrf.mxu0  ;;  %v656_v37 = vpack.c.bf16 %v1428_v35, %v1426_v34 }
  0xc3   : > { %v704_v38 = vadd.f32 %v703_v25, %v476_v36  ;;  %v793_v40 = vmul.f32 %v476_v36, %v476_v36  ;;  %v565_v41 = vpop.f32.mrf.mxu1 }
  0xc4   : > { %v641_v42 = vpack.c.bf16 %v565_v41, %v476_v36  ;;  %v741_v43 = vadd.f32 %v740_v30, %v565_v41  ;;  %v794_v44 = vmul.f32 %v565_v41, %v565_v41  ;;  %688 = vst [vmem:[%s1407_s22 + $0x90] sm:$0xff] %v656_v37 }
  0xc5   : > { %v853_v45 = vadd.f32 %v852_v32, %v793_v40 }
  0xc6   : > { %673 = vst [vmem:[%s1407_s22 + $0x18] sm:$0xff] %v641_v42  ;;  %v890_v46 = vadd.f32 %v889_v33, %v794_v44 }
  0xc8   : > { %v1434_v47 = vpop.f32.mrf.mxu2 }
  0xc9   : > { %v1436_v48 = vpop.f32.mrf.mxu3 }
  0xca   : > { %v479_v49 = vpop.f32.mrf.mxu0  ;;  %v657_v50 = vpack.c.bf16 %v1436_v48, %v1434_v47 }
  0xcb   : > { %v1440_v51 = vadd.f32 %v704_v38, %v479_v49  ;;  %v795_v52 = vmul.f32 %v479_v49, %v479_v49  ;;  %v568_v53 = vpop.f32.mrf.mxu1 }
  0xcc   : > { %v642_v54 = vpack.c.bf16 %v568_v53, %v479_v49  ;;  %v1442_v55 = vadd.f32 %v741_v43, %v568_v53  ;;  %v796_v56 = vmul.f32 %v568_v53, %v568_v53  ;;  %689 = vst [vmem:[%s1407_s22 + $0x98] sm:$0xff] %v657_v50 }
  0xcd   : > { %v1445_v57 = vadd.f32 %v853_v45, %v795_v52 }
  0xce   : > { %674 = vst [vmem:[%s1407_s22 + $0x20] sm:$0xff] %v642_v54  ;;  %v1448_v58 = vadd.f32 %v890_v46, %v796_v56 }
  0xd0   : > { %v1450_v59 = vpop.f32.mrf.mxu2 }
  0xd1   : > { %v1452_v60 = vpop.f32.mrf.mxu3 }
  0xd2   : > { %v1454_v61 = vpop.f32.mrf.mxu0  ;;  %v658_v62 = vpack.c.bf16 %v1452_v60, %v1450_v59 }
  0xd3   : > { %v1458_v63 = vpop.f32.mrf.mxu1  ;;  %v797_v52 = vmul.f32 %v1454_v61, %v1454_v61  ;;  %v706_v54 = vadd.f32 %v1440_v51, %v1454_v61 }
  0xd4   : > { %v643_v0 = vpack.c.bf16 %v1458_v63, %v1454_v61  ;;  %690 = vst [vmem:[%s1407_s22 + $0xa0] sm:$0xff] %v658_v62  ;;  %v798_v53 = vmul.f32 %v1458_v63, %v1458_v63  ;;  %v743_v62 = vadd.f32 %v1442_v55, %v1458_v63 }
  0xd6   : > { %675 = vst [vmem:[%s1407_s22 + $0x28] sm:$0xff] %v643_v0  ;;  %v892_v51 = vadd.f32 %v1448_v58, %v798_v53 }
  0xd8   : > { %v1464_v1 = vpop.f32.mrf.mxu2 }
  0xd9   : > { %v1466_v2 = vpop.f32.mrf.mxu3 }
  0xda   : > { %v484_v3 = vpop.f32.mrf.mxu0  ;;  %v659_v4 = vpack.c.bf16 %v1466_v2, %v1464_v1 }
  0xdb   : > { %v1470_v5 = vpop.f32.mrf.mxu1  ;;  %v799_v56 = vmul.f32 %v484_v3, %v484_v3 }
  0xdc   : > { %v644_v28 = vpack.c.bf16 %v1470_v5, %v484_v3  ;;  %691 = vst [vmem:[%s1407_s22 + $0xa8] sm:$0xff] %v659_v4  ;;  %v800_v0 = vmul.f32 %v1470_v5, %v1470_v5  ;;  %v744_v61 = vadd.f32 %v743_v62, %v1470_v5 }
  0xde   : > { %676 = vst [vmem:[%s1407_s22 + $0x30] sm:$0xff] %v644_v28  ;;  %v855_v28 = vadd.f32 %v1445_v57, %v797_v52 }
  0xe0   : > { %v1475_v39 = vpop.f32.mrf.mxu2  ;;  %v856_v57 = vadd.f32 %v855_v28, %v799_v56 }
  0xe1   : > { %v1477_v6 = vpop.f32.mrf.mxu3 }
  0xe2   : > { %v1479_v9 = vpop.f32.mrf.mxu0  ;;  %v660_v10 = vpack.c.bf16 %v1477_v6, %v1475_v39 }
  0xe3   : > { %v1483_v11 = vpop.f32.mrf.mxu1 }
  0xe4   : > { %v645_v12 = vpack.c.bf16 %v1483_v11, %v1479_v9  ;;  %692 = vst [vmem:[%s1407_s22 + $0xb0] sm:$0xff] %v660_v10  ;;  %v707_v10 = vadd.f32 %v706_v54, %v484_v3  ;;  %v802_v55 = vmul.f32 %v1483_v11, %v1483_v11  ;;  %v745_v58 = vadd.f32 %v744_v61, %v1483_v11 }
  0xe6   : > { %677 = vst [vmem:[%s1407_s22 + $0x38] sm:$0xff] %v645_v12  ;;  %v801_v12 = vmul.f32 %v1479_v9, %v1479_v9  ;;  %v708_v3 = vadd.f32 %v707_v10, %v1479_v9 }
  0xe8   : > { %v1489_v13 = vpop.f32.mrf.mxu2 }
  0xe9   : > { %v1491_v14 = vpop.f32.mrf.mxu3 }
  0xea   : > { %v1493_v15 = vpop.f32.mrf.mxu0  ;;  %v661_v16 = vpack.c.bf16 %v1491_v14, %v1489_v13 }
  0xeb   : > { %v1497_v17 = vpop.f32.mrf.mxu1 }
  0xec   : > { %v646_v18 = vpack.c.bf16 %v1497_v17, %v1493_v15  ;;  %693 = vst [vmem:[%s1407_s22 + $0xb8] sm:$0xff] %v661_v16  ;;  %v804_v5 = vmul.f32 %v1497_v17, %v1497_v17  ;;  %v746_v9 = vadd.f32 %v745_v58, %v1497_v17 }
  0xee   : > { %678 = vst [vmem:[%s1407_s22 + $0x40] sm:$0xff] %v646_v18 }
  0xf0   : > { %v1503_v19 = vpop.f32.mrf.mxu2 }
  0xf1   : > { %v1505_v20 = vpop.f32.mrf.mxu3 }
  0xf2   : > { %v1507_v23 = vpop.f32.mrf.mxu0  ;;  %v662_v24 = vpack.c.bf16 %v1505_v20, %v1503_v19 }
  0xf3   : > { %v1511_v25 = vpop.f32.mrf.mxu1 }
  0xf4   : > { %v647_v26 = vpack.c.bf16 %v1511_v25, %v1507_v23  ;;  %694 = vst [vmem:[%s1407_s22 + $0xc0] sm:$0xff] %v662_v24  ;;  %v803_v24 = vmul.f32 %v1493_v15, %v1493_v15  ;;  %v806_v52 = vmul.f32 %v1511_v25, %v1511_v25  ;;  %v747_v62 = vadd.f32 %v746_v9, %v1511_v25 }
  0xf6   : > { %679 = vst [vmem:[%s1407_s22 + $0x48] sm:$0xff] %v647_v26 }
  0xf8   : > { %v1517_v27 = vpop.f32.mrf.mxu2 }
  0xf9   : > { %v1519_v29 = vpop.f32.mrf.mxu3 }
  0xfa   : > { %v494_v30 = vpop.f32.mrf.mxu0  ;;  %v663_v31 = vpack.c.bf16 %v1519_v29, %v1517_v27 }
  0xfb   : > { %v1523_v32 = vpop.f32.mrf.mxu1  ;;  %v807_v54 = vmul.f32 %v494_v30, %v494_v30 }
  0xfc   : > { %v648_v33 = vpack.c.bf16 %v1523_v32, %v494_v30  ;;  %695 = vst [vmem:[%s1407_s22 + $0xc8] sm:$0xff] %v663_v31  ;;  %v893_v31 = vadd.f32 %v892_v51, %v800_v0 }
  0xfe   : > { %680 = vst [vmem:[%s1407_s22 + $0x50] sm:$0xff] %v648_v33 }
 0x100   : > { %v1528_v36 = vpop.f32.mrf.mxu2 }
 0x101   : > { %v1530_v37 = vpop.f32.mrf.mxu3 }
 0x102   : > { %v1532_v38 = vpop.f32.mrf.mxu0  ;;  %v664_v40 = vpack.c.bf16 %v1530_v37, %v1528_v36 }
 0x103   : > { %v1536_v41 = vpop.f32.mrf.mxu1  ;;  %v809_v17 = vmul.f32 %v1532_v38, %v1532_v38 }
 0x104   : > { %v649_v42 = vpack.c.bf16 %v1536_v41, %v1532_v38  ;;  %696 = vst [vmem:[%s1407_s22 + $0xd0] sm:$0xff] %v664_v40  ;;  %v857_v40 = vadd.f32 %v856_v57, %v801_v12  ;;  %v810_v61 = vmul.f32 %v1536_v41, %v1536_v41 }
 0x106   : > { %681 = vst [vmem:[%s1407_s22 + $0x58] sm:$0xff] %v649_v42  ;;  %v709_v42 = vadd.f32 %v708_v3, %v1493_v15  ;;  %v858_v53 = vadd.f32 %v857_v40, %v803_v24  ;;  %v808_v15 = vmul.f32 %v1523_v32, %v1523_v32 }
 0x108   : > { %v1542_v43 = vpop.f32.mrf.mxu2  ;;  %v710_v11 = vadd.f32 %v709_v42, %v1507_v23 }
 0x109   : > { %v1544_v44 = vpop.f32.mrf.mxu3 }
 0x10a   : > { %v1546_v45 = vpop.f32.mrf.mxu0  ;;  %v665_v46 = vpack.c.bf16 %v1544_v44, %v1542_v43  ;;  %v711_v10 = vadd.f32 %v710_v11, %v494_v30 }
 0x10b   : > { %v1550_v49 = vpop.f32.mrf.mxu1  ;;  %v811_v57 = vmul.f32 %v1546_v45, %v1546_v45 }
 0x10c   : > { %v650_v50 = vpack.c.bf16 %v1550_v49, %v1546_v45  ;;  %697 = vst [vmem:[%s1407_s22 + $0xd8] sm:$0xff] %v665_v46  ;;  %v805_v46 = vmul.f32 %v1507_v23, %v1507_v23  ;;  %v748_v23 = vadd.f32 %v747_v62, %v1523_v32  ;;  %v712_v30 = vadd.f32 %v711_v10, %v1532_v38 }
 0x10d   : > { %v812_v32 = vmul.f32 %v1550_v49, %v1550_v49 }
 0x10e   : > { %682 = vst [vmem:[%s1407_s22 + $0x60] sm:$0xff] %v650_v50  ;;  %v894_v50 = vadd.f32 %v893_v31, %v802_v55  ;;  %v859_v28 = vadd.f32 %v858_v53, %v805_v46  ;;  %v749_v31 = vadd.f32 %v748_v23, %v1536_v41 }
 0x110   : > { %v1566_v4 = vpop.f32.mrf.mxu2  ;;  %v895_v56 = vadd.f32 %v894_v50, %v804_v5  ;;  %v750_v46 = vadd.f32 %v749_v31, %v1550_v49 }
 0x111   : > { %v1571_v16 = vpop.f32.mrf.mxu3 }
 0x112   : > { %v501_v63 = vpop.f32.mrf.mxu0  ;;  %v666_v18 = vpack.c.bf16 %v1571_v16, %v1566_v4  ;;  %v896_v51 = vadd.f32 %v895_v56, %v806_v52 }
 0x113   : > { %v590_v26 = vpop.f32.mrf.mxu1  ;;  %v813_v40 = vmul.f32 %v501_v63, %v501_v63 }
 0x114   : > { %v651_v33 = vpack.c.bf16 %v590_v26, %v501_v63  ;;  %698 = vst [vmem:[%s1407_s22 + $0xe0] sm:$0xff] %v666_v18  ;;  %v860_v18 = vadd.f32 %v859_v28, %v807_v54  ;;  %v897_v24 = vadd.f32 %v896_v51, %v808_v15  ;;  %v814_v38 = vmul.f32 %v590_v26, %v590_v26 }
 0x115   : > { %v751_v11 = vadd.f32 %v750_v46, %v590_v26  ;;  %v823_v46 = vmul.f32 %v1426_v34, %v1426_v34 }
 0x116   : > { %683 = vst [vmem:[%s1407_s22 + $0x68] sm:$0xff] %v651_v33  ;;  %v861_v5 = vadd.f32 %v860_v18, %v809_v17  ;;  %v713_v33 = vadd.f32 %v712_v30, %v1546_v45  ;;  %v898_v42 = vadd.f32 %v897_v24, %v810_v61 }
 0x118   : > { %v1597_v0 = vpop.f32.mrf.mxu2  ;;  %v862_v50 = vadd.f32 %v861_v5, %v811_v57  ;;  %v714_v9 = vadd.f32 %v713_v33, %v501_v63  ;;  %v899_v53 = vadd.f32 %v898_v42, %v812_v32  ;;  %v821_v32 = vmul.f32 %v1418_v21, %v1418_v21 }
 0x119   : > { %v1601_v12 = vpop.f32.mrf.mxu3  ;;  %v822_v33 = vmul.f32 %v1420_v22, %v1420_v22 }
 0x11a   : > { %v504_v25 = vpop.f32.mrf.mxu0  ;;  %v667_v55 = vpack.c.bf16 %v1601_v12, %v1597_v0  ;;  %v863_v56 = vadd.f32 %v862_v50, %v813_v40  ;;  %v900_v45 = vadd.f32 %v899_v53, %v814_v38  ;;  %v825_v53 = vmul.f32 %v1434_v47, %v1434_v47 }
 0x11b   : > { %v593_v3 = vpop.f32.mrf.mxu1  ;;  %v815_v52 = vmul.f32 %v504_v25, %v504_v25  ;;  %v715_v62 = vadd.f32 %v714_v9, %v504_v25 }
 0x11c   : > { %v652_v58 = vpack.c.bf16 %v593_v3, %v504_v25  ;;  %699 = vst [vmem:[%s1407_s22 + $0xe8] sm:$0xff] %v667_v55  ;;  %v816_v41 = vmul.f32 %v593_v3, %v593_v3  ;;  %v752_v28 = vadd.f32 %v751_v11, %v593_v3  ;;  %v819_v25 = vmul.f32 %v1410_v7, %v1410_v7 }
 0x11d   : > { %v864_v17 = vadd.f32 %v863_v56, %v815_v52  ;;  %v820_v3 = vmul.f32 %v1412_v8, %v1412_v8 }
 0x11e   : > { %684 = vst [vmem:[%s1407_s22 + $0x70] sm:$0xff] %v652_v58  ;;  %v901_v26 = vadd.f32 %v900_v45, %v816_v41 }
 0x120   : > { %v1618_v54 = vpop.f32.mrf.mxu2 }
 0x121   : > { %v1620_v15 = vpop.f32.mrf.mxu3 }
 0x122   : > { %v506_v10 = vpop.f32.mrf.mxu0  ;;  %v668_v49 = vpack.c.bf16 %v1620_v15, %v1618_v54 }
 0x123   : > { %v716_v63 = vadd.f32 %v715_v62, %v506_v10  ;;  %v817_v51 = vmul.f32 %v506_v10, %v506_v10  ;;  %v595_v23 = vpop.f32.mrf.mxu1 }
 0x124   : > { %v653_v61 = vpack.c.bf16 %v595_v23, %v506_v10  ;;  %v753_v55 = vadd.f32 %v752_v28, %v595_v23  ;;  %v818_v18 = vmul.f32 %v595_v23, %v595_v23  ;;  %700 = vst [vmem:[%s1407_s22 + $0xf0] sm:$0xff] %v668_v49  ;;  %v828_v10 = vmul.f32 %v1452_v60, %v1452_v60 }
 0x125   : > { %v717_v30 = vadd.f32 %v716_v63, %v1410_v7  ;;  %v865_v57 = vadd.f32 %v864_v17, %v817_v51  ;;  %v829_v17 = vmul.f32 %v1464_v1, %v1464_v1  ;;  %v830_v51 = vmul.f32 %v1466_v2, %v1466_v2 }
 0x126   : > { %685 = vst [vmem:[%s1407_s22 + $0x78] sm:$0xff] %v653_v61  ;;  %v754_v24 = vadd.f32 %v753_v55, %v1412_v8  ;;  %v902_v31 = vadd.f32 %v901_v26, %v818_v18 }
 0x127   : > { %v718_v58 = vadd.f32 %v717_v30, %v1418_v21  ;;  %v866_v5 = vadd.f32 %v865_v57, %v819_v25  ;;  %v824_v21 = vmul.f32 %v1428_v35, %v1428_v35 }
 0x128   : > { %v755_v40 = vadd.f32 %v754_v24, %v1420_v22  ;;  %v903_v7 = vadd.f32 %v902_v31, %v820_v3  ;;  %v1638_v42 = vpop.f32.mrf.mxu2 }
 0x129   : > { %v719_v8 = vadd.f32 %v718_v58, %v1426_v34  ;;  %v867_v38 = vadd.f32 %v866_v5, %v821_v32  ;;  %v1643_v50 = vpop.f32.mrf.mxu3  ;;  %v826_v34 = vmul.f32 %v1436_v48, %v1436_v48 }
 0x12a   : > { %v756_v9 = vadd.f32 %v755_v40, %v1428_v35  ;;  %v904_v52 = vadd.f32 %v903_v7, %v822_v33  ;;  %v669_v22 = vpack.c.bf16 %v1643_v50, %v1638_v42  ;;  %v827_v35 = vmul.f32 %v1450_v59, %v1450_v59 }
 0x12b   : > { %v720_v11 = vadd.f32 %v719_v8, %v1434_v47  ;;  %v868_v41 = vadd.f32 %v867_v38, %v823_v46 }
 0x12c   : > { %v757_v56 = vadd.f32 %v756_v9, %v1436_v48  ;;  %v905_v62 = vadd.f32 %v904_v52, %v824_v21  ;;  %701 = vst [vmem:[%s1407_s22 + $0xf8] sm:$0xff] %v669_v22 }
 0x12d   : > { %v721_v45 = vadd.f32 %v720_v11, %v1450_v59  ;;  %v869_v28 = vadd.f32 %v868_v41, %v825_v53  ;;  %v831_v59 = vmul.f32 %v1475_v39, %v1475_v39  ;;  %v843_v41 = vmul.f32 %v1566_v4, %v1566_v4 }
 0x12e   : > { %v758_v49 = vadd.f32 %v757_v56, %v1452_v60  ;;  %v906_v47 = vadd.f32 %v905_v62, %v826_v34  ;;  %v832_v60 = vmul.f32 %v1477_v6, %v1477_v6  ;;  %v844_v56 = vmul.f32 %v1571_v16, %v1571_v16 }
 0x12f   : > { %v722_v63 = vadd.f32 %v721_v45, %v1464_v1  ;;  %v870_v48 = vadd.f32 %v869_v28, %v827_v35  ;;  %v833_v1 = vmul.f32 %v1489_v13, %v1489_v13  ;;  %v845_v45 = vmul.f32 %v1597_v0, %v1597_v0 }
 0x130   : > { %v759_v23 = vadd.f32 %v758_v49, %v1466_v2  ;;  %v907_v26 = vadd.f32 %v906_v47, %v828_v10  ;;  %v834_v2 = vmul.f32 %v1491_v14, %v1491_v14  ;;  %v846_v10 = vmul.f32 %v1601_v12, %v1601_v12 }
 0x131   : > { %v871_v61 = vadd.f32 %v870_v48, %v829_v17  ;;  %v723_v55 = vadd.f32 %v722_v63, %v1475_v39  ;;  %v835_v39 = vmul.f32 %v1503_v19, %v1503_v19  ;;  %v847_v47 = vmul.f32 %v1618_v54, %v1618_v54 }
 0x132   : > { %v908_v18 = vadd.f32 %v907_v26, %v830_v51  ;;  %v760_v25 = vadd.f32 %v759_v23, %v1477_v6  ;;  %v836_v6 = vmul.f32 %v1505_v20, %v1505_v20  ;;  %v848_v63 = vmul.f32 %v1620_v15, %v1620_v15 }
 0x133   : > { %v724_v30 = vadd.f32 %v723_v55, %v1489_v13  ;;  %v872_v57 = vadd.f32 %v871_v61, %v831_v59  ;;  %v837_v13 = vmul.f32 %v1517_v27, %v1517_v27  ;;  %v849_v51 = vmul.f32 %v1638_v42, %v1638_v42 }
 0x134   : > { %v761_v3 = vadd.f32 %v760_v25, %v1491_v14  ;;  %v909_v24 = vadd.f32 %v908_v18, %v832_v60  ;;  %v838_v14 = vmul.f32 %v1519_v29, %v1519_v29  ;;  %v850_v26 = vmul.f32 %v1643_v50, %v1643_v50 }
 0x135   : > { %v725_v31 = vadd.f32 %v724_v30, %v1503_v19  ;;  %v873_v32 = vadd.f32 %v872_v57, %v833_v1  ;;  %v839_v19 = vmul.f32 %v1528_v36, %v1528_v36 }
 0x136   : > { %v762_v58 = vadd.f32 %v761_v3, %v1505_v20  ;;  %v910_v5 = vadd.f32 %v909_v24, %v834_v2  ;;  %v840_v20 = vmul.f32 %v1530_v37, %v1530_v37 }
 0x137   : > { %v726_v33 = vadd.f32 %v725_v31, %v1517_v27  ;;  %v874_v40 = vadd.f32 %v873_v32, %v835_v39  ;;  %v841_v27 = vmul.f32 %v1542_v43, %v1542_v43 }
 0x138   : > { %v763_v7 = vadd.f32 %v762_v58, %v1519_v29  ;;  %v911_v46 = vadd.f32 %v910_v5, %v836_v6  ;;  %v842_v29 = vmul.f32 %v1544_v44, %v1544_v44  ;;  %v782_v6 = vlaneseq }
 0x139   : > { %v727_v8 = vadd.f32 %v726_v33, %v1528_v36  ;;  %v875_v38 = vadd.f32 %v874_v40, %v837_v13 }
 0x13a   : > { %v764_v21 = vadd.f32 %v763_v7, %v1530_v37  ;;  %v912_v9 = vadd.f32 %v911_v46, %v838_v14  ;;  %vm784_vm1 = vcmp.lt.s32.totalorder %v782_v6, 256 }
 0x13b   : > { %v728_v52 = vadd.f32 %v727_v8, %v1542_v43  ;;  %v876_v22 = vadd.f32 %v875_v38, %v839_v19 }
 0x13c   : > { %v765_v53 = vadd.f32 %v764_v21, %v1544_v44  ;;  %v913_v11 = vadd.f32 %v912_v9, %v840_v20 }
 0x13d   : > { %v729_v36 = vadd.f32 %v728_v52, %v1566_v4  ;;  %v877_v34 = vadd.f32 %v876_v22, %v841_v27 }
 0x13e   : > { %v766_v37 = vadd.f32 %v765_v53, %v1571_v16  ;;  %v914_v62 = vadd.f32 %v913_v11, %v842_v29 }
 0x13f   : > { %v878_v43 = vadd.f32 %v877_v34, %v843_v41  ;;  %v730_v35 = vadd.f32 %v729_v36, %v1597_v0 }
 0x140   : > { %v915_v44 = vadd.f32 %v914_v62, %v844_v56  ;;  %v767_v28 = vadd.f32 %v766_v37, %v1601_v12 }
 0x141   : > { %v879_v4 = vadd.f32 %v878_v43, %v845_v45  ;;  %v731_v49 = vadd.f32 %v730_v35, %v1618_v54 }
 0x142   : > { %v916_v16 = vadd.f32 %v915_v44, %v846_v10  ;;  %v768_v17 = vadd.f32 %v767_v28, %v1620_v15 }
 0x143   : > { %v880_v0 = vadd.f32 %v879_v4, %v847_v47  ;;  %v732_v48 = vadd.f32 %v731_v49, %v1638_v42 }
 0x144   : > { %v917_v12 = vadd.f32 %v916_v16, %v848_v63  ;;  %v769_v23 = vadd.f32 %v768_v17, %v1643_v50 }
 0x145   : > { %v733_v54 = vrot.slane %v732_v48, 4  ;;  %v881_v59 = vadd.f32 %v880_v0, %v849_v51 }
 0x146   : > { %v770_v61 = vrot.slane %v769_v23, 4  ;;  %v918_v55 = vadd.f32 %v917_v12, %v850_v26 }
 0x147   : > { %v734_v60 = vadd.f32 %v733_v54, %v732_v48  ;;  %v882_v18 = vrot.slane %v881_v59, 4 }
 0x148   : > { %v771_v15 = vadd.f32 %v770_v61, %v769_v23  ;;  %v919_v25 = vrot.slane %v918_v55, 4 }
 0x149   : > { %v735_v1 = vrot.slane %v734_v60, 2  ;;  %v883_v30 = vadd.f32 %v882_v18, %v881_v59 }
 0x14a   : > { %v772_v57 = vrot.slane %v771_v15, 2  ;;  %v920_v42 = vadd.f32 %v919_v25, %v918_v55 }
 0x14b   : > { %v736_v2 = vadd.f32 %v735_v1, %v734_v60  ;;  %v884_v3 = vrot.slane %v883_v30, 2 }
 0x14c   : > { %v773_v24 = vadd.f32 %v772_v57, %v771_v15  ;;  %v921_v39 = vrot.slane %v920_v42, 2 }
 0x14d   : > { %v885_v50 = vadd.f32 %v884_v3, %v883_v30  ;;  %v737_v31 = vrot.slane %v736_v2, 1 }
 0x14e   : > { %v774_v32 = vrot.slane %v773_v24, 1  ;;  %v922_v58 = vadd.f32 %v921_v39, %v920_v42 }
 0x14f   : > { %v886_v5 = vrot.slane %v885_v50, 1  ;;  %v738_v40 = vadd.f32 %v737_v31, %v736_v2 }
 0x150   : > { %v775_v13 = vadd.f32 %v774_v32, %v773_v24  ;;  %v923_v33 = vrot.slane %v922_v58, 1 }
 0x151   : > { %v887_v46 = vadd.f32 %v886_v5, %v885_v50 }
 0x152   : > { %v778_v14 = vrot.slane %v775_v13, 7  ;;  %v924_v7 = vadd.f32 %v923_v33, %v922_v58 }
 0x154   : > { %v780_v19 = vsel %vm779_vm0, %v738_v40, %v778_v14  ;;  %v927_v8 = vrot.slane %v924_v7, 7 }
 0x155   : > { %786 = vst.msk [vmem:[%s215_s24] ss:$2 sm:$0x3] %vm784_vm1, %v780_v19 }
 0x156   : > { %v928_v38 = vsel %vm779_vm0, %v887_v46, %v927_v8 }
 0x157   : > { %1099 = vst.msk [vmem:[%s215_s24 + $0x1] ss:$2 sm:$0x3] %vm784_vm1, %v928_v38 }
 0x158 PF: > { %s15_s15 = sadd.s32 1, %s1152_s15  }
 0x159   : > { %p12_p5 = scmp.ge.s32.totalorder %s15_s15, 4  }
 0x15b   :  { %14 = sbr.rel (!%p12_p5) target bundleno = 1 (0x1), region = 75 }

// kernel: resblock_forward.5
= control target key start
LH: loop header
LB: loop body
LE: loop exit
PB: predicated region body
PF: predicated region fallthrough
CT: control target
= control target key end

     0   :  { %10 = vsyncpa [#allocation3], 0  ;;  %s1760_s0 = inlined_call_operand.vmem [shape: bf16[512,256], index: 0, kind: input, shape index: {}]   ;;  %s1761_s1 = inlined_call_operand.vmem [shape: f32[512,128], index: 1, kind: input, shape index: {}]   ;;  %s1762_s2 = inlined_call_operand.vmem [shape: f32[2,256], index: 2, kind: input, shape index: {}]   ;;  %s1763_s3 = inlined_call_operand.vmem [shape: bf16[256,128], index: 3, kind: input, shape index: {}]   ;;  %s1764_s4 = inlined_call_operand.vmem [shape: f32[1,128], index: 4, kind: input, shape index: {}]   ;;  %s1765_s5 = inlined_call_operand.hbm [shape: f32[512,128], index: 5, kind: output, shape index: {}]  }
   0x1   :  { %12 = vsyncpa [#allocation3 + $0x1], 0  ;;  %s1332_s18 = smov 0   ;;  %s1334_s19 = smov 0  }
   0x2   :  { %s1336_s20 = smov 0   ;;  %s1338_s21 = smov 0  }
   0x3 LB: > { %s1353_s22 = sadd.s32 4294967295, %s1298_s21   ;;  %s1080_s23 = sadd.s32 4294967294, %s1298_s21   ;;  %s1298_s21 = sphi %s1338_s21, %s1771_s21   ;;  %s1294_s20 = sphi %s1336_s20, %s1770_s20   ;;  %s1290_s19 = sphi %s1334_s19, %s1769_s19   ;;  %s1286_s18 = sphi %s1332_s18, %s1768_s18  }
   0x4   : > { %s1357_s24 = sadd.s32 1, %s1298_s21   ;;  %s140_s25 = sadd.s32 1, %s1294_s20 }
   0x5   : > { %s137_s26 = ssub.s32 %s1298_s21, %s1357_s24  ;;  %p150_p0 = scmp.ne.s32.totalorder %s1294_s20, %s1290_s19 }
   0x6   : > { %p138_p1 = scmp.eq.s32.totalorder %s137_s26, 0  ;;  %p151_p2 = scmp.eq.s32.totalorder %s1353_s22, 1 }
   0x7   : > { %p156_p3 = scmp.ne.s32.totalorder %s1290_s19, %s1286_s18  ;;  %p157_p4 = scmp.eq.s32.totalorder %s1080_s23, 1 }
   0x8   : > { %s1368_s27 = scalar_select %p138_p1, %s1294_s20, %s140_s25  }
   0x9   : > { %p1370_p5 = por %p151_p2, %p150_p0  ;;  %p1374_p6 = por %p157_p4, %p156_p3 }
   0xa   : > { %p1083_p7 = scmp.ge.s32.totalorder %s1298_s21, 1  ;;  %p203_p8 = scmp.lt.s32.totalorder %s1298_s21, 3 }
   0xc   : > { %p204_p9 = pnand %p1083_p7, %p203_p8 }
   0xd   : > { %s1085_s9 = sshll.u32 (!%p204_p9), %s1353_s22, 5  ;;  %s234_s30 = sand.u32 (!%p204_p9), 1, %s1290_s19  }
   0xe   : > { %207 = sbr.rel (%p204_p9) target bundleno = 313 (0x139), region = 40  ;;  %p238_p10 = scmp.lt.s32.totalorder (!%p204_p9), %s1085_s9, 63 }
   0xf   : > { %s1084_s10 = sshll.u32 (!%p204_p9), %s234_s30, 8  ;;  %s1256_s6 = scalar_lea.hbm (!%p204_p9), %s1765_s5, 512 }
  0x10   : > { %s1630_s11 = scalar_lea.vmem (!%p204_p9), [#allocation2], %s1084_s10 }
  0x11   : > { %s1003_s15 = sshll.u32 (!%p204_p9), %s1630_s11, 4  ;;  %s1004_s15 = int_to_ptr.vmem [resolvable:$true] %s1003_s15 }
  0x13   : > { %v1168_v0 = vld [vmem:[%s1763_s3 + $0x38] sm:$0xff]  ;;  %v1167_v2 = vld [vmem:[%s1763_s3 + $0x30] sm:$0xff]  ;;  %s1773_s9 = smov (!%p238_p10, %s1085_s9), 63  ;;  %v1166_v4 = vld [vmem:[%s1763_s3 + $0x28] sm:$0xff] }
  0x14   : > { %v1176_v1 = vld [vmem:[%s1763_s3 + $0x78] sm:$0xff]  ;;  %716 = vmatpush.bf16.msra.mxu0 %v1168_v0  ;;  %1178 = vmatpush.bf16.msra.mxu2 %v1168_v0  ;;  %v1175_v3 = vld [vmem:[%s1763_s3 + $0x70] sm:$0xff]  ;;  %s1160_s14 = sshll.u32 %s1773_s9, 3  ;;  %v1174_v5 = vld [vmem:[%s1763_s3 + $0x68] sm:$0xff]  ;;  %s1177_s9 = sshll.u32 %s1353_s22, 8 }
  0x15   : > { %805 = vmatpush.bf16.msra.mxu1 %v1176_v1  ;;  %1186 = vmatpush.bf16.msra.mxu3 %v1176_v1  ;;  %s1404_s25 = scalar_lea.vmem %s1760_s0, %s1160_s14  ;;  %v347_v8 = vld [vmem:[%s1762_s2] ss:$2 sm:$0x3]  ;;  %v1090_v16 = vld [vmem:[%s1762_s2 + $0x1] ss:$2 sm:$0x3]  ;;  %s1624_s8 = scalar_lea.vmem %s1761_s1, %s1160_s14 }
  0x16   : > { %v251_v6 = vld [vmem:[%s1404_s25] sm:$0xff]  ;;  %v252_v7 = vld [vmem:[%s1404_s25 + $0x8] sm:$0xff]  ;;  %v1422_v13 = vperm.slane %v347_v8, 0  ;;  %v1427_v21 = vperm.slane %v347_v8, 1  ;;  %v1164_v22 = vld [vmem:[%s1763_s3 + $0x18] sm:$0xff]  ;;  %v1435_v26 = vperm.slane %v1090_v16, 0  ;;  %s1002_s13 = scalar_lea.hbm %s1765_s5, %s1177_s9 }
  0x17   : > { %v267_v9 = vld [vmem:[%s1404_s25 + $0x80] sm:$0xff]  ;;  %v268_v10 = vld [vmem:[%s1404_s25 + $0x88] sm:$0xff]  ;;  %v283_v14 = vunpack.c.l.bf16 %v251_v6  ;;  %v285_v15 = vunpack.c.l.bf16 %v252_v7  ;;  %v284_v19 = vunpack.c.h.bf16 %v251_v6  ;;  %v286_v20 = vunpack.c.h.bf16 %v252_v7  ;;  %v1172_v25 = vld [vmem:[%s1763_s3 + $0x58] sm:$0xff]  ;;  %s1005_s16 = sshll.u32 %s1002_s13, 4  ;;  %s991_s22 = scalar_lea.sflag [#allocation3], %s234_s30  ;;  %s1006_s16 = int_to_ptr.hbm [resolvable:$true] %s1005_s16 }
  0x18   : > { %717 = vmatpush.bf16.msra.mxu0 %v1167_v2  ;;  %1179 = vmatpush.bf16.msra.mxu2 %v1167_v2  ;;  %v1165_v11 = vld [vmem:[%s1763_s3 + $0x20] sm:$0xff]  ;;  %v315_v17 = vunpack.c.l.bf16 %v267_v9  ;;  %v317_v18 = vunpack.c.l.bf16 %v268_v10  ;;  %v316_v23 = vunpack.c.h.bf16 %v267_v9  ;;  %v318_v24 = vunpack.c.h.bf16 %v268_v10  ;;  %v1163_v34 = vld [vmem:[%s1763_s3 + $0x10] sm:$0xff]  ;;  %v1162_v44 = vld [vmem:[%s1763_s3 + $0x8] sm:$0xff]  ;;  %s1250_s17 = sshra.s32 %s1006_s16, 4  ;;  %s1251_s17 = int_to_ptr.hbm [resolvable:$true] %s1250_s17 }
  0x19   : > { %806 = vmatpush.bf16.msra.mxu1 %v1175_v3  ;;  %1187 = vmatpush.bf16.msra.mxu3 %v1175_v3  ;;  %v1173_v12 = vld [vmem:[%s1763_s3 + $0x60] sm:$0xff]  ;;  %v353_v27 = vmul.f32 %v1422_v13, %v283_v14  ;;  %v355_v28 = vmul.f32 %v1422_v13, %v285_v15  ;;  %v354_v31 = vmul.f32 %v1427_v21, %v284_v19  ;;  %v1443_v33 = vperm.slane %v1090_v16, 1  ;;  %v1171_v37 = vld [vmem:[%s1763_s3 + $0x50] sm:$0xff]  ;;  %v1170_v47 = vld [vmem:[%s1763_s3 + $0x48] sm:$0xff]  ;;  %s1252_s23 = scalar_lea.hbm %s1251_s17, 256  ;;  %p1257_p0 = scmp.lt.s32.totalorder %s1251_s17, %s1765_s5 }
  0x1a   : > { %v385_v29 = vmul.f32 %v1422_v13, %v315_v17  ;;  %v387_v30 = vmul.f32 %v1422_v13, %v317_v18  ;;  %v356_v32 = vmul.f32 %v1427_v21, %v286_v20  ;;  %v386_v35 = vmul.f32 %v1427_v21, %v316_v23  ;;  %v253_v54 = vld [vmem:[%s1404_s25 + $0x10] sm:$0xff]  ;;  %v254_v55 = vld [vmem:[%s1404_s25 + $0x18] sm:$0xff]  ;;  %v1161_v56 = vld [vmem:[%s1763_s3] sm:$0xff]  ;;  %p1253_p11 = scmp.ne.s32.totalorder %s1251_s17, %s1252_s23  ;;  %p1258_p1 = scmp.lt.s32.totalorder %s1256_s6, %s1252_s23 }
  0x1b   : > { %v388_v36 = vmul.f32 %v1427_v21, %v318_v24  ;;  %v424_v38 = vadd.f32 %v1435_v26, %v353_v27  ;;  %v426_v39 = vadd.f32 %v1435_v26, %v355_v28  ;;  %v425_v42 = vadd.f32 %v1443_v33, %v354_v31  ;;  %v269_v59 = vld [vmem:[%s1404_s25 + $0x90] sm:$0xff]  ;;  %v270_v60 = vld [vmem:[%s1404_s25 + $0x98] sm:$0xff]  ;;  %v1169_v61 = vld [vmem:[%s1763_s3 + $0x40] sm:$0xff] }
  0x1c   : > { %718 = vmatpush.bf16.msra.mxu0 %v1166_v4  ;;  %1180 = vmatpush.bf16.msra.mxu2 %v1166_v4  ;;  %v456_v40 = vadd.f32 %v1435_v26, %v385_v29  ;;  %v458_v41 = vadd.f32 %v1435_v26, %v387_v30  ;;  %v427_v43 = vadd.f32 %v1443_v33, %v356_v32  ;;  %v287_v0 = vunpack.c.l.bf16 %v253_v54  ;;  %v255_v29 = vld [vmem:[%s1404_s25 + $0x20] sm:$0xff]  ;;  %v256_v30 = vld [vmem:[%s1404_s25 + $0x28] sm:$0xff]  ;;  %p1254_p12 = pnand %p1253_p11, %p1370_p5  ;;  %p1259_p2 = por %p1258_p1, %p1257_p0 }
  0x1d   : > { %807 = vmatpush.bf16.msra.mxu1 %v1174_v5  ;;  %1188 = vmatpush.bf16.msra.mxu3 %v1174_v5  ;;  %v457_v45 = vadd.f32 %v1443_v33, %v386_v35  ;;  %v459_v46 = vadd.f32 %v1443_v33, %v388_v36  ;;  %v488_v48 = vmax.f32 %v424_v38, 0.0  ;;  %v490_v49 = vmax.f32 %v426_v39, 0.0  ;;  %v271_v36 = vld [vmem:[%s1404_s25 + $0xa0] sm:$0xff] }
  0x1e   : > { %v520_v50 = vmax.f32 %v456_v40, 0.0  ;;  %v522_v51 = vmax.f32 %v458_v41, 0.0  ;;  %v489_v52 = vmax.f32 %v425_v42, 0.0  ;;  %v491_v53 = vmax.f32 %v427_v43, 0.0  ;;  %p1255_p13 = pneg %p1254_p12 }
  0x1f   : > { %v521_v57 = vmax.f32 %v457_v45, 0.0  ;;  %v523_v58 = vmax.f32 %v459_v46, 0.0  ;;  %v552_v62 = vpack.c.bf16 %v490_v49, %v488_v48  ;;  %v289_v1 = vunpack.c.l.bf16 %v254_v55 }
  0x20   : > { %719 = vmatpush.bf16.msra.mxu0 %v1165_v11  ;;  %1181 = vmatpush.bf16.msra.mxu2 %v1165_v11  ;;  %v568_v63 = vpack.c.bf16 %v522_v51, %v520_v50  ;;  %v553_v2 = vpack.c.bf16 %v491_v53, %v489_v52  ;;  %v319_v3 = vunpack.c.l.bf16 %v269_v59  ;;  %v321_v4 = vunpack.c.l.bf16 %v270_v60  ;;  %p1260_p3 = pnand %p1259_p2, %p1255_p13 }
  0x21   : > { %808 = vmatpush.bf16.msra.mxu1 %v1173_v12  ;;  %1189 = vmatpush.bf16.msra.mxu3 %v1173_v12  ;;  %v288_v5 = vunpack.c.h.bf16 %v253_v54  ;;  %v569_v6 = vpack.c.bf16 %v523_v58, %v521_v57  ;;  %v290_v7 = vunpack.c.h.bf16 %v254_v55  ;;  %v320_v8 = vunpack.c.h.bf16 %v269_v59 }
  0x22   : > { %v322_v9 = vunpack.c.h.bf16 %v270_v60  ;;  %v357_v10 = vmul.f32 %v1422_v13, %v287_v0  ;;  %v359_v11 = vmul.f32 %v1422_v13, %v289_v1  ;;  %v389_v12 = vmul.f32 %v1422_v13, %v319_v3 }
  0x23   : > { %v391_v14 = vmul.f32 %v1422_v13, %v321_v4  ;;  %v358_v15 = vmul.f32 %v1427_v21, %v288_v5  ;;  %v360_v16 = vmul.f32 %v1427_v21, %v290_v7  ;;  %v390_v17 = vmul.f32 %v1427_v21, %v320_v8 }
  0x24   : > { %720 = vmatpush.bf16.msra.mxu0 %v1164_v22  ;;  %1182 = vmatpush.bf16.msra.mxu2 %v1164_v22  ;;  %v392_v18 = vmul.f32 %v1427_v21, %v322_v9  ;;  %v428_v19 = vadd.f32 %v1435_v26, %v357_v10  ;;  %v430_v20 = vadd.f32 %v1435_v26, %v359_v11  ;;  %v291_v42 = vunpack.c.l.bf16 %v255_v29 }
  0x25   : > { %809 = vmatpush.bf16.msra.mxu1 %v1172_v25  ;;  %1190 = vmatpush.bf16.msra.mxu3 %v1172_v25  ;;  %v460_v22 = vadd.f32 %v1435_v26, %v389_v12  ;;  %v462_v23 = vadd.f32 %v1435_v26, %v391_v14  ;;  %v429_v24 = vadd.f32 %v1443_v33, %v358_v15  ;;  %v293_v43 = vunpack.c.l.bf16 %v256_v30  ;;  %v257_v12 = vld [vmem:[%s1404_s25 + $0x30] sm:$0xff]  ;;  %v258_v14 = vld [vmem:[%s1404_s25 + $0x38] sm:$0xff] }
  0x26   : > { %v431_v25 = vadd.f32 %v1443_v33, %v360_v16  ;;  %v461_v27 = vadd.f32 %v1443_v33, %v390_v17  ;;  %v463_v28 = vadd.f32 %v1443_v33, %v392_v18  ;;  %v492_v31 = vmax.f32 %v428_v19, 0.0  ;;  %v273_v17 = vld [vmem:[%s1404_s25 + $0xb0] sm:$0xff]  ;;  %v274_v18 = vld [vmem:[%s1404_s25 + $0xb8] sm:$0xff] }
  0x27   : > { %v494_v32 = vmax.f32 %v430_v20, 0.0  ;;  %v526_v35 = vmax.f32 %v462_v23, 0.0  ;;  %v493_v38 = vmax.f32 %v429_v24, 0.0  ;;  %v292_v48 = vunpack.c.h.bf16 %v255_v29 }
  0x28   : > { %721 = vmatpush.bf16.msra.mxu0 %v1163_v34  ;;  %1183 = vmatpush.bf16.msra.mxu2 %v1163_v34  ;;  %v524_v34 = vmax.f32 %v460_v22, 0.0  ;;  %v495_v39 = vmax.f32 %v431_v25, 0.0  ;;  %v525_v40 = vmax.f32 %v461_v27, 0.0  ;;  %v527_v41 = vmax.f32 %v463_v28, 0.0 }
  0x29   : > { %810 = vmatpush.bf16.msra.mxu1 %v1171_v37  ;;  %1191 = vmatpush.bf16.msra.mxu3 %v1171_v37  ;;  %v272_v37 = vld [vmem:[%s1404_s25 + $0xa8] sm:$0xff]  ;;  %v554_v46 = vpack.c.bf16 %v494_v32, %v492_v31  ;;  %v294_v49 = vunpack.c.h.bf16 %v256_v30  ;;  %v324_v52 = vunpack.c.h.bf16 %v271_v36  ;;  %v361_v54 = vmul.f32 %v1422_v13, %v291_v42 }
  0x2a   : > { %v325_v45 = vunpack.c.l.bf16 %v272_v37  ;;  %v555_v50 = vpack.c.bf16 %v495_v39, %v493_v38  ;;  %v571_v51 = vpack.c.bf16 %v527_v41, %v525_v40  ;;  %v326_v53 = vunpack.c.h.bf16 %v272_v37 }
  0x2b   : > { %v363_v55 = vmul.f32 %v1422_v13, %v293_v43  ;;  %v362_v58 = vmul.f32 %v1427_v21, %v292_v48  ;;  %v364_v59 = vmul.f32 %v1427_v21, %v294_v49  ;;  %v394_v60 = vmul.f32 %v1427_v21, %v324_v52 }
  0x2c   : > { %722 = vmatpush.bf16.msra.mxu0 %v1162_v44  ;;  %1184 = vmatpush.bf16.msra.mxu2 %v1162_v44  ;;  %v323_v44 = vunpack.c.l.bf16 %v271_v36  ;;  %v395_v57 = vmul.f32 %v1422_v13, %v325_v45  ;;  %v295_v22 = vunpack.c.l.bf16 %v257_v12  ;;  %v297_v23 = vunpack.c.l.bf16 %v258_v14 }
  0x2d   : > { %811 = vmatpush.bf16.msra.mxu1 %v1170_v47  ;;  %1192 = vmatpush.bf16.msra.mxu3 %v1170_v47  ;;  %v570_v47 = vpack.c.bf16 %v526_v35, %v524_v34  ;;  %v435_v3 = vadd.f32 %v1443_v33, %v364_v59  ;;  %v465_v4 = vadd.f32 %v1443_v33, %v394_v60  ;;  %v327_v25 = vunpack.c.l.bf16 %v273_v17 }
  0x2e   : > { %v466_v1 = vadd.f32 %v1435_v26, %v395_v57  ;;  %v329_v27 = vunpack.c.l.bf16 %v274_v18  ;;  %v296_v28 = vunpack.c.h.bf16 %v257_v12  ;;  %v298_v30 = vunpack.c.h.bf16 %v258_v14  ;;  %v276_v57 = vld [vmem:[%s1404_s25 + $0xc8] sm:$0xff] }
  0x2f   : > { %v499_v11 = vmax.f32 %v435_v3, 0.0  ;;  %v529_v15 = vmax.f32 %v465_v4, 0.0  ;;  %v328_v31 = vunpack.c.h.bf16 %v273_v17  ;;  %v330_v32 = vunpack.c.h.bf16 %v274_v18 }
  0x30   : > { %723 = vmatpush.bf16.msra.mxu0 %v1161_v56  ;;  %1185 = vmatpush.bf16.msra.mxu2 %v1161_v56  ;;  %v393_v56 = vmul.f32 %v1422_v13, %v323_v44  ;;  %v530_v9 = vmax.f32 %v466_v1, 0.0  ;;  %v365_v34 = vmul.f32 %v1422_v13, %v295_v22  ;;  %v367_v35 = vmul.f32 %v1422_v13, %v297_v23 }
  0x31   : > { %812 = vmatpush.bf16.msra.mxu1 %v1169_v61  ;;  %1193 = vmatpush.bf16.msra.mxu3 %v1169_v61  ;;  %v396_v61 = vmul.f32 %v1427_v21, %v326_v53  ;;  %v397_v36 = vmul.f32 %v1422_v13, %v327_v25  ;;  %v399_v37 = vmul.f32 %v1422_v13, %v329_v27  ;;  %v333_v1 = vunpack.c.l.bf16 %v276_v57 }
  0x32   : > { %v464_v0 = vadd.f32 %v1435_v26, %v393_v56  ;;  %v366_v38 = vmul.f32 %v1427_v21, %v296_v28  ;;  %v368_v39 = vmul.f32 %v1427_v21, %v298_v30  ;;  %v398_v40 = vmul.f32 %v1427_v21, %v328_v31  ;;  %v275_v56 = vld [vmem:[%s1404_s25 + $0xc0] sm:$0xff] }
  0x33   : > { %724 = vmatmul.bf16.vlgmr.msra.gmra.mxu0 %v552_v62  ;;  %764 = vmatmul.bf16.vlgmr.msra.gmra.mxu2 %v568_v63  ;;  %v432_v62 = vadd.f32 %v1435_v26, %v361_v54  ;;  %v434_v63 = vadd.f32 %v1435_v26, %v363_v55  ;;  %v467_v5 = vadd.f32 %v1443_v33, %v396_v61  ;;  %v260_v55 = vld [vmem:[%s1404_s25 + $0x48] sm:$0xff] }
  0x34   : > { %813 = vmatmul.bf16.vlgmr.msra.gmra.mxu1 %v553_v2  ;;  %853 = vmatmul.bf16.vlgmr.msra.gmra.mxu3 %v569_v6  ;;  %v433_v2 = vadd.f32 %v1443_v33, %v362_v58  ;;  %v528_v8 = vmax.f32 %v464_v0, 0.0  ;;  %v400_v41 = vmul.f32 %v1427_v21, %v330_v32  ;;  %v436_v42 = vadd.f32 %v1435_v26, %v365_v34 }
  0x35   : > { %v496_v6 = vmax.f32 %v432_v62, 0.0  ;;  %v498_v7 = vmax.f32 %v434_v63, 0.0  ;;  %v531_v16 = vmax.f32 %v467_v5, 0.0  ;;  %v438_v43 = vadd.f32 %v1435_v26, %v367_v35 }
  0x36   : > { %v497_v10 = vmax.f32 %v433_v2, 0.0  ;;  %v572_v20 = vpack.c.bf16 %v530_v9, %v528_v8  ;;  %v468_v44 = vadd.f32 %v1435_v26, %v397_v36  ;;  %v470_v45 = vadd.f32 %v1435_v26, %v399_v37  ;;  %v261_v36 = vld [vmem:[%s1404_s25 + $0x50] sm:$0xff]  ;;  %v262_v37 = vld [vmem:[%s1404_s25 + $0x58] sm:$0xff] }
  0x37   : > { %v556_v19 = vpack.c.bf16 %v498_v7, %v496_v6  ;;  %v573_v29 = vpack.c.bf16 %v531_v16, %v529_v15  ;;  %v469_v48 = vadd.f32 %v1443_v33, %v398_v40  ;;  %v471_v49 = vadd.f32 %v1443_v33, %v400_v41  ;;  %v277_v40 = vld [vmem:[%s1404_s25 + $0xd0] sm:$0xff]  ;;  %v278_v41 = vld [vmem:[%s1404_s25 + $0xd8] sm:$0xff] }
  0x38   : > { %v557_v24 = vpack.c.bf16 %v499_v11, %v497_v10  ;;  %v502_v52 = vmax.f32 %v438_v43, 0.0  ;;  %v532_v53 = vmax.f32 %v468_v44, 0.0  ;;  %v534_v54 = vmax.f32 %v470_v45, 0.0 }
  0x39   : > { %v533_v60 = vmax.f32 %v469_v48, 0.0  ;;  %v535_v61 = vmax.f32 %v471_v49, 0.0  ;;  %v301_v63 = vunpack.c.l.bf16 %v260_v55  ;;  %v331_v0 = vunpack.c.l.bf16 %v275_v56 }
  0x3a   : > { %v574_v3 = vpack.c.bf16 %v534_v54, %v532_v53  ;;  %v302_v5 = vunpack.c.h.bf16 %v260_v55  ;;  %v332_v8 = vunpack.c.h.bf16 %v275_v56  ;;  %v334_v9 = vunpack.c.h.bf16 %v276_v57 }
  0x3b   : > { %v575_v7 = vpack.c.bf16 %v535_v61, %v533_v60  ;;  %v371_v11 = vmul.f32 %v1422_v13, %v301_v63  ;;  %v401_v12 = vmul.f32 %v1422_v13, %v331_v0  ;;  %v403_v14 = vmul.f32 %v1422_v13, %v333_v1 }
  0x3c   : > { %v372_v16 = vmul.f32 %v1427_v21, %v302_v5  ;;  %v402_v17 = vmul.f32 %v1427_v21, %v332_v8  ;;  %v404_v18 = vmul.f32 %v1427_v21, %v334_v9  ;;  %v303_v44 = vunpack.c.l.bf16 %v261_v36 }
  0x3d   : > { %v472_v22 = vadd.f32 %v1435_v26, %v401_v12  ;;  %v474_v23 = vadd.f32 %v1435_v26, %v403_v14  ;;  %v305_v45 = vunpack.c.l.bf16 %v262_v37  ;;  %v337_v48 = vunpack.c.l.bf16 %v278_v41  ;;  %v279_v12 = vld [vmem:[%s1404_s25 + $0xe0] sm:$0xff]  ;;  %v280_v14 = vld [vmem:[%s1404_s25 + $0xe8] sm:$0xff] }
  0x3e   : > { %v443_v25 = vadd.f32 %v1443_v33, %v372_v16  ;;  %v473_v27 = vadd.f32 %v1443_v33, %v402_v17  ;;  %v475_v28 = vadd.f32 %v1443_v33, %v404_v18  ;;  %v304_v49 = vunpack.c.h.bf16 %v261_v36 }
  0x3f   : > { %v536_v31 = vmax.f32 %v472_v22, 0.0  ;;  %v538_v32 = vmax.f32 %v474_v23, 0.0  ;;  %v338_v53 = vunpack.c.h.bf16 %v278_v41  ;;  %v373_v54 = vmul.f32 %v1422_v13, %v303_v44 }
  0x40   : > { %v507_v35 = vmax.f32 %v443_v25, 0.0  ;;  %v375_v55 = vmul.f32 %v1422_v13, %v305_v45  ;;  %v407_v57 = vmul.f32 %v1422_v13, %v337_v48  ;;  %v339_v22 = vunpack.c.l.bf16 %v279_v12 }
  0x41   : > { %v576_v43 = vpack.c.bf16 %v538_v32, %v536_v31  ;;  %v408_v61 = vmul.f32 %v1427_v21, %v338_v53  ;;  %v341_v23 = vunpack.c.l.bf16 %v280_v14  ;;  %v340_v31 = vunpack.c.h.bf16 %v279_v12 }
  0x42   : > { %v446_v63 = vadd.f32 %v1435_v26, %v375_v55  ;;  %v478_v1 = vadd.f32 %v1435_v26, %v407_v57  ;;  %v342_v32 = vunpack.c.h.bf16 %v280_v14  ;;  %v409_v36 = vmul.f32 %v1422_v13, %v339_v22  ;;  %v266_v57 = vld [vmem:[%s1404_s25 + $0x78] sm:$0xff] }
  0x43   : > { %729 = vmatmul.bf16.gmra.mxu0 %v554_v46  ;;  %769 = vmatmul.bf16.gmra.mxu2 %v570_v47  ;;  %v437_v46 = vadd.f32 %v1443_v33, %v366_v38  ;;  %v439_v47 = vadd.f32 %v1443_v33, %v368_v39  ;;  %v537_v38 = vmax.f32 %v473_v27, 0.0  ;;  %v539_v39 = vmax.f32 %v475_v28, 0.0 }
  0x44   : > { %818 = vmatmul.bf16.gmra.mxu1 %v555_v50  ;;  %858 = vmatmul.bf16.gmra.mxu3 %v571_v51  ;;  %v500_v50 = vmax.f32 %v436_v42, 0.0  ;;  %v259_v51 = vld [vmem:[%s1404_s25 + $0x40] sm:$0xff]  ;;  %v479_v5 = vadd.f32 %v1443_v33, %v408_v61  ;;  %v510_v8 = vmax.f32 %v446_v63, 0.0  ;;  %v412_v41 = vmul.f32 %v1427_v21, %v342_v32  ;;  %v282_v61 = vld [vmem:[%s1404_s25 + $0xf8] sm:$0xff] }
  0x45   : > { %v501_v58 = vmax.f32 %v437_v46, 0.0  ;;  %v503_v59 = vmax.f32 %v439_v47, 0.0  ;;  %v299_v62 = vunpack.c.l.bf16 %v259_v51  ;;  %v300_v4 = vunpack.c.h.bf16 %v259_v51 }
  0x46   : > { %v558_v2 = vpack.c.bf16 %v502_v52, %v500_v50  ;;  %v335_v47 = vunpack.c.l.bf16 %v277_v40  ;;  %v577_v50 = vpack.c.bf16 %v539_v39, %v537_v38  ;;  %v306_v51 = vunpack.c.h.bf16 %v262_v37 }
  0x47   : > { %v559_v6 = vpack.c.bf16 %v503_v59, %v501_v58  ;;  %v369_v10 = vmul.f32 %v1422_v13, %v299_v62  ;;  %v370_v15 = vmul.f32 %v1427_v21, %v300_v4  ;;  %v336_v52 = vunpack.c.h.bf16 %v277_v40 }
  0x48   : > { %v405_v56 = vmul.f32 %v1422_v13, %v335_v47  ;;  %v374_v58 = vmul.f32 %v1427_v21, %v304_v49  ;;  %v376_v59 = vmul.f32 %v1427_v21, %v306_v51  ;;  %v444_v62 = vadd.f32 %v1435_v26, %v373_v54 }
  0x49   : > { %v406_v60 = vmul.f32 %v1427_v21, %v336_v52  ;;  %v543_v18 = vmax.f32 %v479_v5, 0.0  ;;  %v411_v37 = vmul.f32 %v1422_v13, %v341_v23  ;;  %v410_v40 = vmul.f32 %v1427_v21, %v340_v31 }
  0x4a   : > { %v476_v0 = vadd.f32 %v1435_v26, %v405_v56  ;;  %v480_v44 = vadd.f32 %v1435_v26, %v409_v36  ;;  %v483_v49 = vadd.f32 %v1443_v33, %v412_v41  ;;  %v265_v56 = vld [vmem:[%s1404_s25 + $0x70] sm:$0xff] }
  0x4b   : > { %v477_v4 = vadd.f32 %v1443_v33, %v406_v60  ;;  %v482_v45 = vadd.f32 %v1435_v26, %v411_v37  ;;  %v481_v48 = vadd.f32 %v1443_v33, %v410_v40  ;;  %v281_v60 = vld [vmem:[%s1404_s25 + $0xf0] sm:$0xff]  ;;  %v312_v5 = vunpack.c.h.bf16 %v265_v56 }
  0x4c   : > { %v540_v9 = vmax.f32 %v476_v0, 0.0  ;;  %v544_v52 = vmax.f32 %v480_v44, 0.0  ;;  %v311_v0 = vunpack.c.l.bf16 %v265_v56 }
  0x4d   : > { %v541_v17 = vmax.f32 %v477_v4, 0.0  ;;  %v546_v53 = vmax.f32 %v482_v45, 0.0  ;;  %v345_v4 = vunpack.c.l.bf16 %v282_v61 }
  0x4f   : > { %v580_v63 = vpack.c.bf16 %v546_v53, %v544_v52  ;;  %v415_v14 = vmul.f32 %v1422_v13, %v345_v4  ;;  %v895_v53 = vld [vmem:[%s1624_s8 + $0x8] sm:$0xff] }
  0x51   : > { %v486_v23 = vadd.f32 %v1435_v26, %v415_v14  ;;  %v897_v14 = vld [vmem:[%s1624_s8 + $0x18] sm:$0xff] }
  0x53   : > { %734 = vmatmul.bf16.gmra.mxu0 %v556_v19  ;;  %774 = vmatmul.bf16.gmra.mxu2 %v572_v20  ;;  %v440_v19 = vadd.f32 %v1435_v26, %v369_v10  ;;  %v442_v20 = vadd.f32 %v1435_v26, %v371_v11  ;;  %v542_v10 = vmax.f32 %v478_v1, 0.0  ;;  %v264_v11 = vld [vmem:[%s1404_s25 + $0x68] sm:$0xff]  ;;  %v313_v1 = vunpack.c.l.bf16 %v266_v57 }
  0x54   : > { %823 = vmatmul.bf16.gmra.mxu1 %v557_v24  ;;  %863 = vmatmul.bf16.gmra.mxu3 %v573_v29  ;;  %v441_v24 = vadd.f32 %v1443_v33, %v370_v15  ;;  %v310_v28 = vunpack.c.h.bf16 %v264_v11 }
  0x55   : > { %v504_v29 = vmax.f32 %v440_v19, 0.0  ;;  %v506_v30 = vmax.f32 %v442_v20, 0.0  ;;  %v309_v20 = vunpack.c.l.bf16 %v264_v11  ;;  %v578_v25 = vpack.c.bf16 %v542_v10, %v540_v9 }
  0x56   : > { %v505_v34 = vmax.f32 %v441_v24, 0.0  ;;  %v380_v39 = vmul.f32 %v1427_v21, %v310_v28  ;;  %v346_v9 = vunpack.c.h.bf16 %v282_v61  ;;  %v381_v10 = vmul.f32 %v1422_v13, %v311_v0 }
  0x57   : > { %v560_v42 = vpack.c.bf16 %v506_v30, %v504_v29  ;;  %v579_v30 = vpack.c.bf16 %v543_v18, %v541_v17  ;;  %v383_v11 = vmul.f32 %v1422_v13, %v313_v1  ;;  %v896_v1 = vld [vmem:[%s1624_s8 + $0x10] sm:$0xff] }
  0x58   : > { %v561_v46 = vpack.c.bf16 %v507_v35, %v505_v34  ;;  %v379_v35 = vmul.f32 %v1422_v13, %v309_v20  ;;  %v451_v47 = vadd.f32 %v1443_v33, %v380_v39  ;;  %v416_v18 = vmul.f32 %v1427_v21, %v346_v9 }
  0x59   : > { %v454_v20 = vadd.f32 %v1435_v26, %v383_v11 }
  0x5a   : > { %v515_v55 = vmax.f32 %v451_v47, 0.0 }
  0x63   : > { %739 = vmatmul.bf16.gmra.mxu0 %v558_v2  ;;  %779 = vmatmul.bf16.gmra.mxu2 %v574_v3  ;;  %v445_v2 = vadd.f32 %v1443_v33, %v374_v58  ;;  %v447_v3 = vadd.f32 %v1443_v33, %v376_v59  ;;  %v545_v58 = vmax.f32 %v481_v48, 0.0  ;;  %v547_v59 = vmax.f32 %v483_v49, 0.0  ;;  %v910_v48 = vld [vmem:[%s1624_s8 + $0x80] sm:$0xff] }
  0x64   : > { %828 = vmatmul.bf16.gmra.mxu1 %v559_v6  ;;  %868 = vmatmul.bf16.gmra.mxu3 %v575_v7  ;;  %v508_v6 = vmax.f32 %v444_v62, 0.0  ;;  %v263_v7 = vld [vmem:[%s1404_s25 + $0x60] sm:$0xff] }
  0x65   : > { %v509_v15 = vmax.f32 %v445_v2, 0.0  ;;  %v511_v16 = vmax.f32 %v447_v3, 0.0  ;;  %v307_v19 = vunpack.c.l.bf16 %v263_v7  ;;  %v308_v27 = vunpack.c.h.bf16 %v263_v7 }
  0x66   : > { %v562_v24 = vpack.c.bf16 %v510_v8, %v508_v6  ;;  %v343_v3 = vunpack.c.l.bf16 %v281_v60  ;;  %v581_v6 = vpack.c.bf16 %v547_v59, %v545_v58  ;;  %v314_v7 = vunpack.c.h.bf16 %v266_v57 }
  0x67   : > { %v563_v29 = vpack.c.bf16 %v511_v16, %v509_v15  ;;  %v377_v34 = vmul.f32 %v1422_v13, %v307_v19  ;;  %v378_v38 = vmul.f32 %v1427_v21, %v308_v27  ;;  %v344_v8 = vunpack.c.h.bf16 %v281_v60  ;;  %v911_v60 = vld [vmem:[%s1624_s8 + $0x88] sm:$0xff] }
  0x68   : > { %v413_v12 = vmul.f32 %v1422_v13, %v343_v3  ;;  %v382_v15 = vmul.f32 %v1427_v21, %v312_v5  ;;  %v384_v16 = vmul.f32 %v1427_v21, %v314_v7  ;;  %v452_v19 = vadd.f32 %v1435_v26, %v381_v10 }
  0x69   : > { %v414_v17 = vmul.f32 %v1427_v21, %v344_v8  ;;  %v487_v27 = vadd.f32 %v1443_v33, %v416_v18  ;;  %v912_v8 = vld [vmem:[%s1624_s8 + $0x90] sm:$0xff] }
  0x6a   : > { %v484_v22 = vadd.f32 %v1435_v26, %v413_v12  ;;  %v453_v13 = vadd.f32 %v1443_v33, %v382_v15  ;;  %v516_v28 = vmax.f32 %v452_v19, 0.0 }
  0x6c   : > { %v548_v21 = vmax.f32 %v484_v22, 0.0  ;;  %v517_v31 = vmax.f32 %v453_v13, 0.0  ;;  %v913_v22 = vld [vmem:[%s1624_s8 + $0x98] sm:$0xff] }
  0x73   : > { %744 = vmatmul.bf16.gmra.mxu0 %v560_v42  ;;  %784 = vmatmul.bf16.gmra.mxu2 %v576_v43  ;;  %v448_v42 = vadd.f32 %v1435_v26, %v377_v34  ;;  %v450_v43 = vadd.f32 %v1435_v26, %v379_v35  ;;  %v551_v35 = vmax.f32 %v487_v27, 0.0  ;;  %v898_v27 = vld [vmem:[%s1624_s8 + $0x20] sm:$0xff] }
  0x74   : > { %833 = vmatmul.bf16.gmra.mxu1 %v561_v46  ;;  %873 = vmatmul.bf16.gmra.mxu3 %v577_v50  ;;  %v449_v46 = vadd.f32 %v1443_v33, %v378_v38 }
  0x75   : > { %v512_v50 = vmax.f32 %v448_v42, 0.0  ;;  %v514_v51 = vmax.f32 %v450_v43, 0.0  ;;  %v894_v42 = vld [vmem:[%s1624_s8] sm:$0xff] }
  0x76   : > { %v513_v54 = vmax.f32 %v449_v46, 0.0 }
  0x77   : > { %v564_v62 = vpack.c.bf16 %v514_v51, %v512_v50 }
  0x78   : > { %v565_v2 = vpack.c.bf16 %v515_v55, %v513_v54 }
  0x83   : > { %749 = vmatmul.bf16.gmra.mxu0 %v562_v24  ;;  %789 = vmatmul.bf16.gmra.mxu2 %v578_v25  ;;  %v455_v24 = vadd.f32 %v1443_v33, %v384_v16  ;;  %v485_v25 = vadd.f32 %v1443_v33, %v414_v17  ;;  %v1616_v33 = vld [vmem:[%s1764_s4] ss:$0 sm:$0xff] }
  0x84   : > { %838 = vmatmul.bf16.gmra.mxu1 %v563_v29  ;;  %878 = vmatmul.bf16.gmra.mxu3 %v579_v30  ;;  %v518_v29 = vmax.f32 %v454_v20, 0.0  ;;  %v550_v30 = vmax.f32 %v486_v23, 0.0 }
  0x85   : > { %v519_v32 = vmax.f32 %v455_v24, 0.0  ;;  %v549_v34 = vmax.f32 %v485_v25, 0.0 }
  0x86   : > { %v566_v26 = vpack.c.bf16 %v518_v29, %v516_v28  ;;  %v582_v36 = vpack.c.bf16 %v550_v30, %v548_v21 }
  0x87   : > { %v567_v37 = vpack.c.bf16 %v519_v32, %v517_v31  ;;  %v583_v38 = vpack.c.bf16 %v551_v35, %v549_v34  ;;  %v914_v34 = vld [vmem:[%s1624_s8 + $0xa0] sm:$0xff] }
  0x93   : > { %754 = vmatmul.bf16.gmra.mxu0 %v564_v62  ;;  %794 = vmatmul.bf16.gmra.mxu2 %v580_v63 }
  0x94   : > { %843 = vmatmul.bf16.gmra.mxu1 %v565_v2  ;;  %883 = vmatmul.bf16.gmra.mxu3 %v581_v6 }
  0xa3   : > { %759 = vmatmul.bf16.gmra.mxu0 %v566_v26  ;;  %799 = vmatmul.bf16.gmra.mxu2 %v582_v36 }
  0xa4   : > { %848 = vmatmul.bf16.gmra.mxu1 %v567_v37  ;;  %888 = vmatmul.bf16.gmra.mxu3 %v583_v38  ;;  %v899_v38 = vld [vmem:[%s1624_s8 + $0x28] sm:$0xff] }
  0xb0   : > { %v725_v39 = vpop.f32.mrf.mxu0 }
  0xb1   : > { %v726_v40 = vadd.f32 %v1616_v33, %v725_v39  ;;  %v814_v41 = vpop.f32.mrf.mxu1 }
  0xb3   : > { %v815_v43 = vadd.f32 %v814_v41, %v726_v40 }
  0xb5   : > { %v926_v44 = vadd.f32 %v894_v42, %v815_v43 }
  0xb6   : > { %v765_v45 = vpop.f32.mrf.mxu2 }
  0xb7   : > { %958 = vst [vmem:[%s1630_s11] sm:$0xff] %v926_v44  ;;  %v766_v46 = vadd.f32 %v1616_v33, %v765_v45  ;;  %v854_v47 = vpop.f32.mrf.mxu3  ;;  %v915_v45 = vld [vmem:[%s1624_s8 + $0xa8] sm:$0xff] }
  0xb8   : > { %v727_v49 = vpop.f32.mrf.mxu0 }
  0xb9   : > { %v855_v50 = vadd.f32 %v854_v47, %v766_v46  ;;  %v728_v51 = vadd.f32 %v1616_v33, %v727_v49  ;;  %v816_v52 = vpop.f32.mrf.mxu1 }
  0xbb   : > { %v942_v54 = vadd.f32 %v910_v48, %v855_v50  ;;  %v817_v55 = vadd.f32 %v816_v52, %v728_v51  ;;  %v900_v50 = vld [vmem:[%s1624_s8 + $0x30] sm:$0xff] }
  0xbd   : > { %974 = vst [vmem:[%s1630_s11 + $0x80] sm:$0xff] %v942_v54  ;;  %v927_v56 = vadd.f32 %v895_v53, %v817_v55 }
  0xbe   : > { %v767_v57 = vpop.f32.mrf.mxu2 }
  0xbf   : > { %959 = vst [vmem:[%s1630_s11 + $0x8] sm:$0xff] %v927_v56  ;;  %v768_v58 = vadd.f32 %v1616_v33, %v767_v57  ;;  %v856_v59 = vpop.f32.mrf.mxu3  ;;  %v916_v57 = vld [vmem:[%s1624_s8 + $0xb0] sm:$0xff] }
  0xc0   : > { %v730_v61 = vpop.f32.mrf.mxu0 }
  0xc1   : > { %v857_v62 = vadd.f32 %v856_v59, %v768_v58  ;;  %v731_v63 = vadd.f32 %v1616_v33, %v730_v61  ;;  %v819_v0 = vpop.f32.mrf.mxu1 }
  0xc3   : > { %v943_v2 = vadd.f32 %v911_v60, %v857_v62  ;;  %v820_v3 = vadd.f32 %v819_v0, %v731_v63  ;;  %v901_v62 = vld [vmem:[%s1624_s8 + $0x38] sm:$0xff] }
  0xc5   : > { %975 = vst [vmem:[%s1630_s11 + $0x88] sm:$0xff] %v943_v2  ;;  %v928_v4 = vadd.f32 %v896_v1, %v820_v3 }
  0xc6   : > { %v770_v5 = vpop.f32.mrf.mxu2 }
  0xc7   : > { %960 = vst [vmem:[%s1630_s11 + $0x10] sm:$0xff] %v928_v4  ;;  %v771_v6 = vadd.f32 %v1616_v33, %v770_v5  ;;  %v859_v7 = vpop.f32.mrf.mxu3  ;;  %v917_v5 = vld [vmem:[%s1624_s8 + $0xb8] sm:$0xff] }
  0xc8   : > { %v732_v9 = vpop.f32.mrf.mxu0 }
  0xc9   : > { %v860_v10 = vadd.f32 %v859_v7, %v771_v6  ;;  %v733_v11 = vadd.f32 %v1616_v33, %v732_v9  ;;  %v821_v12 = vpop.f32.mrf.mxu1 }
  0xcb   : > { %v944_v15 = vadd.f32 %v912_v8, %v860_v10  ;;  %v822_v16 = vadd.f32 %v821_v12, %v733_v11  ;;  %v902_v10 = vld [vmem:[%s1624_s8 + $0x40] sm:$0xff] }
  0xcd   : > { %976 = vst [vmem:[%s1630_s11 + $0x90] sm:$0xff] %v944_v15  ;;  %v929_v17 = vadd.f32 %v897_v14, %v822_v16 }
  0xce   : > { %v772_v18 = vpop.f32.mrf.mxu2 }
  0xcf   : > { %961 = vst [vmem:[%s1630_s11 + $0x18] sm:$0xff] %v929_v17  ;;  %v773_v19 = vadd.f32 %v1616_v33, %v772_v18  ;;  %v861_v20 = vpop.f32.mrf.mxu3  ;;  %v918_v18 = vld [vmem:[%s1624_s8 + $0xc0] sm:$0xff] }
  0xd0   : > { %v735_v23 = vpop.f32.mrf.mxu0 }
  0xd1   : > { %v862_v13 = vadd.f32 %v861_v20, %v773_v19  ;;  %v736_v24 = vadd.f32 %v1616_v33, %v735_v23  ;;  %v824_v25 = vpop.f32.mrf.mxu1 }
  0xd3   : > { %v945_v28 = vadd.f32 %v913_v22, %v862_v13  ;;  %v825_v29 = vadd.f32 %v824_v25, %v736_v24  ;;  %v903_v13 = vld [vmem:[%s1624_s8 + $0x48] sm:$0xff] }
  0xd5   : > { %977 = vst [vmem:[%s1630_s11 + $0x98] sm:$0xff] %v945_v28  ;;  %v930_v21 = vadd.f32 %v898_v27, %v825_v29 }
  0xd6   : > { %v775_v30 = vpop.f32.mrf.mxu2 }
  0xd7   : > { %962 = vst [vmem:[%s1630_s11 + $0x20] sm:$0xff] %v930_v21  ;;  %v776_v31 = vadd.f32 %v1616_v33, %v775_v30  ;;  %v864_v32 = vpop.f32.mrf.mxu3  ;;  %v919_v30 = vld [vmem:[%s1624_s8 + $0xc8] sm:$0xff] }
  0xd8   : > { %v737_v35 = vpop.f32.mrf.mxu0 }
  0xd9   : > { %v865_v26 = vadd.f32 %v864_v32, %v776_v31  ;;  %v738_v36 = vadd.f32 %v1616_v33, %v737_v35  ;;  %v826_v37 = vpop.f32.mrf.mxu1 }
  0xdb   : > { %v946_v39 = vadd.f32 %v914_v34, %v865_v26  ;;  %v827_v40 = vadd.f32 %v826_v37, %v738_v36  ;;  %v904_v26 = vld [vmem:[%s1624_s8 + $0x50] sm:$0xff] }
  0xdd   : > { %978 = vst [vmem:[%s1630_s11 + $0xa0] sm:$0xff] %v946_v39  ;;  %v931_v41 = vadd.f32 %v899_v38, %v827_v40 }
  0xde   : > { %v777_v42 = vpop.f32.mrf.mxu2 }
  0xdf   : > { %963 = vst [vmem:[%s1630_s11 + $0x28] sm:$0xff] %v931_v41  ;;  %v778_v43 = vadd.f32 %v1616_v33, %v777_v42  ;;  %v866_v44 = vpop.f32.mrf.mxu3  ;;  %v920_v42 = vld [vmem:[%s1624_s8 + $0xd0] sm:$0xff] }
  0xe0   : > { %v740_v46 = vpop.f32.mrf.mxu0 }
  0xe1   : > { %v867_v47 = vadd.f32 %v866_v44, %v778_v43  ;;  %v741_v48 = vadd.f32 %v1616_v33, %v740_v46  ;;  %v829_v49 = vpop.f32.mrf.mxu1 }
  0xe3   : > { %v947_v51 = vadd.f32 %v915_v45, %v867_v47  ;;  %v830_v52 = vadd.f32 %v829_v49, %v741_v48  ;;  %v905_v47 = vld [vmem:[%s1624_s8 + $0x58] sm:$0xff] }
  0xe5   : > { %979 = vst [vmem:[%s1630_s11 + $0xa8] sm:$0xff] %v947_v51  ;;  %v932_v53 = vadd.f32 %v900_v50, %v830_v52 }
  0xe6   : > { %v780_v54 = vpop.f32.mrf.mxu2 }
  0xe7   : > { %964 = vst [vmem:[%s1630_s11 + $0x30] sm:$0xff] %v932_v53  ;;  %v781_v55 = vadd.f32 %v1616_v33, %v780_v54  ;;  %v869_v56 = vpop.f32.mrf.mxu3  ;;  %v921_v54 = vld [vmem:[%s1624_s8 + $0xd8] sm:$0xff] }
  0xe8   : > { %v742_v58 = vpop.f32.mrf.mxu0 }
  0xe9   : > { %v870_v59 = vadd.f32 %v869_v56, %v781_v55  ;;  %v743_v60 = vadd.f32 %v1616_v33, %v742_v58  ;;  %v831_v61 = vpop.f32.mrf.mxu1 }
  0xeb   : > { %v948_v63 = vadd.f32 %v916_v57, %v870_v59  ;;  %v832_v0 = vadd.f32 %v831_v61, %v743_v60  ;;  %v906_v59 = vld [vmem:[%s1624_s8 + $0x60] sm:$0xff] }
  0xed   : > { %980 = vst [vmem:[%s1630_s11 + $0xb0] sm:$0xff] %v948_v63  ;;  %v933_v1 = vadd.f32 %v901_v62, %v832_v0 }
  0xee   : > { %v782_v2 = vpop.f32.mrf.mxu2 }
  0xef   : > { %965 = vst [vmem:[%s1630_s11 + $0x38] sm:$0xff] %v933_v1  ;;  %v783_v3 = vadd.f32 %v1616_v33, %v782_v2  ;;  %v871_v4 = vpop.f32.mrf.mxu3  ;;  %v922_v2 = vld [vmem:[%s1624_s8 + $0xe0] sm:$0xff] }
  0xf0   : > { %v745_v6 = vpop.f32.mrf.mxu0 }
  0xf1   : > { %v872_v7 = vadd.f32 %v871_v4, %v783_v3  ;;  %v746_v8 = vadd.f32 %v1616_v33, %v745_v6  ;;  %v834_v9 = vpop.f32.mrf.mxu1 }
  0xf3   : > { %v949_v11 = vadd.f32 %v917_v5, %v872_v7  ;;  %v835_v12 = vadd.f32 %v834_v9, %v746_v8  ;;  %v907_v7 = vld [vmem:[%s1624_s8 + $0x68] sm:$0xff] }
  0xf5   : > { %981 = vst [vmem:[%s1630_s11 + $0xb8] sm:$0xff] %v949_v11  ;;  %v934_v14 = vadd.f32 %v902_v10, %v835_v12 }
  0xf6   : > { %v785_v15 = vpop.f32.mrf.mxu2 }
  0xf7   : > { %966 = vst [vmem:[%s1630_s11 + $0x40] sm:$0xff] %v934_v14  ;;  %v786_v16 = vadd.f32 %v1616_v33, %v785_v15  ;;  %v874_v17 = vpop.f32.mrf.mxu3  ;;  %v923_v15 = vld [vmem:[%s1624_s8 + $0xe8] sm:$0xff] }
  0xf8   : > { %v747_v19 = vpop.f32.mrf.mxu0 }
  0xf9   : > { %v875_v20 = vadd.f32 %v874_v17, %v786_v16  ;;  %v748_v22 = vadd.f32 %v1616_v33, %v747_v19  ;;  %v836_v23 = vpop.f32.mrf.mxu1 }
  0xfb   : > { %v950_v24 = vadd.f32 %v918_v18, %v875_v20  ;;  %v837_v25 = vadd.f32 %v836_v23, %v748_v22  ;;  %v908_v20 = vld [vmem:[%s1624_s8 + $0x70] sm:$0xff] }
  0xfd   : > { %982 = vst [vmem:[%s1630_s11 + $0xc0] sm:$0xff] %v950_v24  ;;  %v935_v27 = vadd.f32 %v903_v13, %v837_v25 }
  0xfe   : > { %v787_v28 = vpop.f32.mrf.mxu2 }
  0xff   : > { %967 = vst [vmem:[%s1630_s11 + $0x48] sm:$0xff] %v935_v27  ;;  %v788_v29 = vadd.f32 %v1616_v33, %v787_v28  ;;  %v876_v21 = vpop.f32.mrf.mxu3  ;;  %v924_v28 = vld [vmem:[%s1624_s8 + $0xf0] sm:$0xff] }
 0x100   : > { %v750_v31 = vpop.f32.mrf.mxu0 }
 0x101   : > { %v877_v32 = vadd.f32 %v876_v21, %v788_v29  ;;  %v751_v34 = vadd.f32 %v1616_v33, %v750_v31  ;;  %v839_v35 = vpop.f32.mrf.mxu1 }
 0x103   : > { %v951_v36 = vadd.f32 %v919_v30, %v877_v32  ;;  %v840_v37 = vadd.f32 %v839_v35, %v751_v34  ;;  %v909_v32 = vld [vmem:[%s1624_s8 + $0x78] sm:$0xff] }
 0x105   : > { %983 = vst [vmem:[%s1630_s11 + $0xc8] sm:$0xff] %v951_v36  ;;  %v936_v38 = vadd.f32 %v904_v26, %v840_v37 }
 0x106   : > { %v790_v39 = vpop.f32.mrf.mxu2 }
 0x107   : > { %968 = vst [vmem:[%s1630_s11 + $0x50] sm:$0xff] %v936_v38  ;;  %v791_v40 = vadd.f32 %v1616_v33, %v790_v39  ;;  %v879_v41 = vpop.f32.mrf.mxu3  ;;  %v925_v39 = vld [vmem:[%s1624_s8 + $0xf8] sm:$0xff] }
 0x108   : > { %v752_v43 = vpop.f32.mrf.mxu0 }
 0x109   : > { %v880_v44 = vadd.f32 %v879_v41, %v791_v40  ;;  %v753_v45 = vadd.f32 %v1616_v33, %v752_v43  ;;  %v841_v46 = vpop.f32.mrf.mxu1 }
 0x10b   : > { %v952_v48 = vadd.f32 %v920_v42, %v880_v44  ;;  %v842_v49 = vadd.f32 %v841_v46, %v753_v45 }
 0x10d   : > { %984 = vst [vmem:[%s1630_s11 + $0xd0] sm:$0xff] %v952_v48  ;;  %v937_v50 = vadd.f32 %v905_v47, %v842_v49 }
 0x10e   : > { %v792_v51 = vpop.f32.mrf.mxu2 }
 0x10f   : > { %969 = vst [vmem:[%s1630_s11 + $0x58] sm:$0xff] %v937_v50  ;;  %v793_v52 = vadd.f32 %v1616_v33, %v792_v51  ;;  %v881_v53 = vpop.f32.mrf.mxu3 }
 0x110   : > { %v755_v55 = vpop.f32.mrf.mxu0 }
 0x111   : > { %v882_v56 = vadd.f32 %v881_v53, %v793_v52  ;;  %v756_v57 = vadd.f32 %v1616_v33, %v755_v55  ;;  %v844_v58 = vpop.f32.mrf.mxu1 }
 0x113   : > { %v953_v60 = vadd.f32 %v921_v54, %v882_v56  ;;  %v845_v61 = vadd.f32 %v844_v58, %v756_v57 }
 0x115   : > { %985 = vst [vmem:[%s1630_s11 + $0xd8] sm:$0xff] %v953_v60  ;;  %v938_v62 = vadd.f32 %v906_v59, %v845_v61 }
 0x116   : > { %v795_v63 = vpop.f32.mrf.mxu2 }
 0x117   : > { %970 = vst [vmem:[%s1630_s11 + $0x60] sm:$0xff] %v938_v62  ;;  %v796_v0 = vadd.f32 %v1616_v33, %v795_v63  ;;  %v884_v1 = vpop.f32.mrf.mxu3 }
 0x118   : > { %v757_v3 = vpop.f32.mrf.mxu0 }
 0x119   : > { %v885_v4 = vadd.f32 %v884_v1, %v796_v0  ;;  %v758_v5 = vadd.f32 %v1616_v33, %v757_v3  ;;  %v846_v6 = vpop.f32.mrf.mxu1 }
 0x11b   : > { %v954_v8 = vadd.f32 %v922_v2, %v885_v4  ;;  %v847_v9 = vadd.f32 %v846_v6, %v758_v5 }
 0x11d   : > { %986 = vst [vmem:[%s1630_s11 + $0xe0] sm:$0xff] %v954_v8  ;;  %v939_v10 = vadd.f32 %v907_v7, %v847_v9 }
 0x11e   : > { %v797_v11 = vpop.f32.mrf.mxu2 }
 0x11f   : > { %971 = vst [vmem:[%s1630_s11 + $0x68] sm:$0xff] %v939_v10  ;;  %v798_v12 = vadd.f32 %v1616_v33, %v797_v11  ;;  %v886_v14 = vpop.f32.mrf.mxu3 }
 0x120   : > { %v760_v16 = vpop.f32.mrf.mxu0 }
 0x121   : > { %v887_v17 = vadd.f32 %v886_v14, %v798_v12  ;;  %v761_v18 = vadd.f32 %v1616_v33, %v760_v16  ;;  %v849_v19 = vpop.f32.mrf.mxu1 }
 0x123   : > { %v955_v22 = vadd.f32 %v923_v15, %v887_v17  ;;  %v850_v23 = vadd.f32 %v849_v19, %v761_v18 }
 0x125   : > { %987 = vst [vmem:[%s1630_s11 + $0xe8] sm:$0xff] %v955_v22  ;;  %v940_v13 = vadd.f32 %v908_v20, %v850_v23 }
 0x126   : > { %v800_v24 = vpop.f32.mrf.mxu2 }
 0x127   : > { %972 = vst [vmem:[%s1630_s11 + $0x70] sm:$0xff] %v940_v13  ;;  %v801_v25 = vadd.f32 %v1616_v33, %v800_v24  ;;  %v889_v27 = vpop.f32.mrf.mxu3 }
 0x128   : > { %v762_v29 = vpop.f32.mrf.mxu0 }
 0x129   : > { %v890_v21 = vadd.f32 %v889_v27, %v801_v25  ;;  %v763_v30 = vadd.f32 %v1616_v33, %v762_v29  ;;  %v851_v31 = vpop.f32.mrf.mxu1 }
 0x12b   : > { %v956_v34 = vadd.f32 %v924_v28, %v890_v21  ;;  %v852_v35 = vadd.f32 %v851_v31, %v763_v30 }
 0x12d   : > { %988 = vst [vmem:[%s1630_s11 + $0xf0] sm:$0xff] %v956_v34  ;;  %v941_v26 = vadd.f32 %v909_v32, %v852_v35 }
 0x12e   : > { %v802_v36 = vpop.f32.mrf.mxu2 }
 0x12f   : > { %973 = vst [vmem:[%s1630_s11 + $0x78] sm:$0xff] %v941_v26  ;;  %v803_v37 = vadd.f32 %v1616_v33, %v802_v36  ;;  %v891_v38 = vpop.f32.mrf.mxu3 }
 0x131   : > { %v892_v40 = vadd.f32 %v891_v38, %v803_v37 }
 0x133   : > { %v957_v41 = vadd.f32 %v925_v39, %v892_v40 }
 0x135   : > { %989 = vst [vmem:[%s1630_s11 + $0xf8] sm:$0xff] %v957_v41 }
 0x136   : > { %1263 = shalt.err (!%p1260_p3)
}
 0x137   : > { %s1300_s30 = smov 128   ;;  %s1301_s10 = smov 8  }
 0x138   : > { %1194 = dma.vmem_to_hbm [thread:$0]  (%p1370_p5), %s1004_s15, 4096, %s1006_s16, %s991_s22, %s1300_s30, %s1300_s30, %s1301_s10  }
 0x139 PF: > { %p1200_p4 = scmp.ge.s32.totalorder %s1298_s21, 2  ;;  %s1020_s11 = sand.u32 1, %s1286_s18  }
 0x13a   : > { %s1021_s9 = scalar_lea.sflag [#allocation3], %s1020_s11 }
 0x13b   : > { %p1197_p7 = pnand %p1200_p4, %p1374_p6 }
 0x13d   : > { %p1198_p8 = pneg %p1197_p7 }
 0x13f   : > { %1281 = dma.done.wait (%p1198_p8), %s1021_s9, 4096  }
 0x140   : > { %1283 = vsyncadd (%p1198_p8), %s1021_s9, 4294963200  ;;  %p15_p9 = scmp.ge.s32.totalorder %s1357_s24, 4   ;;  %s1768_s18 = smov %s1290_s19 }
 0x141   : > { %s1769_s19 = smov %s1294_s20  ;;  %s1770_s20 = smov %s1368_s27 }
 0x142   : > { %s1771_s21 = smov %s1357_s24  ;;  %17 = sbr.rel (!%p15_p9) target bundleno = 3 (0x3), region = 79 }
 0x147   :  { %1027 = vsyncpa [#allocation3], 1 }
 0x148   :  { %1029 = vsyncpa [#allocation3 + $0x1], 1 }

</bundles_post_ra>
